<compile_context>
chip_gen: v5e
topology: v5e:2x2
jax: 0.10.0
libtpu: 0.0.40
codegen_flags: <defaults>
</compile_context>

<pallas_src>
import functools
import math

import jax
import jax.numpy as jnp
from jax import lax
from jax.experimental import pallas as pl
from jax.experimental.pallas import tpu as pltpu

BIG_NEG = 1.0e12


def _global_pointer_kernel(x_ref, wq_ref, wk_ref, bq_ref, bk_ref,
                           sinq_ref, cosq_ref, sink_ref, cosk_ref, mask_ref,
                           out_ref, kw_scratch,
                           *, head_size, inner_dim, tq, big_neg_scaled):
    """One (batch, head, q-tile) step: project -> RoPE -> q @ k^T -> mask."""
    h = pl.program_id(1)
    qi = pl.program_id(2)
    half = inner_dim // 2
    seq = out_ref.shape[-1]

    # ---- Key projection + RoPE for ALL heads, once per batch element. -----
    # Output is produced directly transposed, (head*inner, S), so the scratch
    # (and the S x S matmul RHS) is lane-dense along S and the MXU output
    # width is head*inner instead of a single head's inner.
    @pl.when((h == 0) & (qi == 0))
    def _():
        xk = x_ref[0]                                                 # (S, H) bf16
        # wk_ref is (head*inner, H); contract both operands over H (A.B^T form).
        kw_all = lax.dot_general(wk_ref[...], xk,
                                 (((1,), (1,)), ((), ())),
                                 preferred_element_type=jnp.float32)  # (head*inner, S)
        kw_all = kw_all + bk_ref[...]                                 # (head*inner, 1) bcast
        for hh in range(head_size):                                   # static unroll
            kw_h = kw_all[hh * inner_dim:(hh + 1) * inner_dim, :]     # (inner, S) f32
            kw_h = (kw_h * cosk_ref[...]
                    + pltpu.roll(kw_h, half, axis=0) * sink_ref[...])
            kw_scratch[hh] = kw_h.astype(kw_scratch.dtype)

    # ---- Query projection + RoPE for this (head, q-tile). -----------------
    # 1/sqrt(inner) is folded into Wq/bq in the glue; RoPE commutes with it.
    row0 = pl.multiple_of(qi * tq, tq)
    xq = x_ref[0, pl.ds(row0, tq), :]                                 # (tq, H) bf16
    qw = jnp.dot(xq, wq_ref[h], preferred_element_type=jnp.float32) + bq_ref[h]
    qw = (qw * cosq_ref[pl.ds(row0, tq), :]
          + pltpu.roll(qw, half, axis=1) * sinq_ref[pl.ds(row0, tq), :])

    # ---- logits[m, n] = sum_d qw[m, d] * kw[d, n]: lane-dense MXU matmul. --
    logits = jnp.dot(qw.astype(jnp.bfloat16), kw_scratch[h],
                     preferred_element_type=jnp.float32)              # (tq, S)

    # ---- Epilogue (f32): additive padding + strict-lower-tri penalties. ----
    # col_add implements "-(1-pad)*1e12"; the tril penalty is generated from
    # iota in-kernel (no HBM table) and stays additive so overlapped positions
    # keep the reference's doubled -2e12/sqrt(d) value.
    pad = mask_ref[0]                                                 # (1, S)
    col_add = (pad - 1.0) * big_neg_scaled
    row_idx = row0 + lax.broadcasted_iota(jnp.int32, (tq, seq), 0)
    col_idx = lax.broadcasted_iota(jnp.int32, (tq, seq), 1)
    tril_add = jnp.where(row_idx > col_idx,
                         jnp.float32(-big_neg_scaled), jnp.float32(0.0))
    out_ref[0, 0] = (logits * pad + col_add + tril_add).astype(out_ref.dtype)


def _chip_budget(seq_len):
    """(max q-tile, vmem_limit_bytes) tuned per TPU generation."""
    try:
        kind = jax.devices()[0].device_kind.lower()
    except Exception:
        kind = ""
    if any(g in kind for g in ("v4", "v5", "v6")):
        # 128 MiB physical VMEM parts: bigger output tiles -> fewer grid steps
        # (~0.35us fixed overhead each) and larger lane-dense stores.
        return 1024, 96 * 1024 * 1024
    # v7x (64 MiB physical VMEM) or unknown part: stay <= ~48 MiB so Mosaic's
    # internal scratch still fits; shrink tq further for very long sequences.
    return (256 if seq_len >= 8192 else 512), 48 * 1024 * 1024


def _pick_tq(seq_len, tq_max):
    """Largest q-tile that is a multiple of 8 and divides S (or S itself)."""
    if seq_len <= tq_max:
        return seq_len
    t = (tq_max // 8) * 8
    while t >= 8:
        if seq_len % t == 0:
            return t
        t -= 8
    # TODO(synk): pad S (or add an in-kernel ragged-row mask) for sequence
    # lengths with no multiple-of-8 divisor <= tq_max; fall back to one tile.
    return seq_len


def global_pointer_forward(sequence_output, mask, weight, bias, *,
                           head_size, inner_dim, rope=True,
                           out_dtype=jnp.float32):
    """GlobalPointer forward.

    sequence_output: (B, S, H) f32; mask: (B, S) f32 in {0,1};
    weight: (H, head*inner*2); bias: (head*inner*2,).
    Returns (B, head, S, S) logits in `out_dtype`.  Pass out_dtype=jnp.bfloat16
    to halve the dominant HBM writeback when the downstream loss thresholds
    the -1e12/sqrt(d) sentinels instead of comparing them exactly.
    """
    assert rope, "this kernel always applies RoPE (rope=True)"
    B, S, H = sequence_output.shape
    assert inner_dim % 2 == 0
    inv_scale = 1.0 / math.sqrt(inner_dim)
    big_neg_scaled = BIG_NEG * inv_scale

    # ---- glue: per-head views, rotate-half column permutation, 1/sqrt(inner)
    # ---- folded into q, all-head fused/transposed k weights, bf16 operands. --
    w4 = weight.reshape(H, head_size, 2, inner_dim)        # cols: [head][q|k][d]
    b3 = bias.reshape(head_size, 2, inner_dim)
    perm = jnp.concatenate([jnp.arange(0, inner_dim, 2),
                            jnp.arange(1, inner_dim, 2)])   # interleaved -> [evens, odds]

    wq = jnp.transpose(w4[:, :, 0, :], (1, 0, 2))[:, :, perm] * inv_scale     # (head, H, inner)
    bq = (b3[:, 0, :][:, perm] * inv_scale)[:, None, :].astype(jnp.float32)   # (head, 1, inner)

    wk_t = jnp.transpose(w4[:, :, 1, :][:, :, perm], (1, 2, 0))               # (head, inner, H)
    wk_t = wk_t.reshape(head_size * inner_dim, H)                             # (head*inner, H)
    bk_t = b3[:, 1, :][:, perm].reshape(head_size * inner_dim, 1).astype(jnp.float32)

    # NOTE: bf16 contraction over H; validated at test H, re-check at H>=1024
    # (or keep the weights f32) if the downstream tolerance is tight.
    x_b = sequence_output.astype(jnp.bfloat16)
    wq_b = wq.astype(jnp.bfloat16)
    wk_b = wk_t.astype(jnp.bfloat16)
    mask3 = mask.reshape(B, 1, S).astype(jnp.float32)

    # RoPE tables in rotate-half layout (sign folded into sin), bf16, shipped
    # in both (S, inner) [q side] and (inner, S) [transposed k side] layouts so
    # neither projection needs an in-kernel transpose.
    pos = jnp.arange(S, dtype=jnp.float32)
    idx = jnp.arange(inner_dim // 2, dtype=jnp.float32)
    freqs = jnp.power(10000.0, -2.0 * idx / inner_dim)
    ang = pos[:, None] * freqs[None, :]                                       # (S, inner/2)
    cos_q = jnp.concatenate([jnp.cos(ang), jnp.cos(ang)], -1).astype(jnp.bfloat16)
    sin_q = jnp.concatenate([-jnp.sin(ang), jnp.sin(ang)], -1).astype(jnp.bfloat16)
    cos_k = cos_q.T                                                           # (inner, S)
    sin_k = sin_q.T

    tq_max, vmem_limit = _chip_budget(S)
    tq = _pick_tq(S, tq_max)
    nq = S // tq

    kernel = functools.partial(_global_pointer_kernel, head_size=head_size,
                               inner_dim=inner_dim, tq=tq,
                               big_neg_scaled=big_neg_scaled)

    flops = B * head_size * (4 * S * H * inner_dim + 2 * S * S * inner_dim)
    bytes_accessed = (x_b.size * 2 + (wq_b.size + wk_b.size) * 2
                      + (cos_q.size + sin_q.size + cos_k.size + sin_k.size) * 2
                      + (bq.size + bk_t.size + mask3.size) * 4
                      + B * head_size * S * S * jnp.dtype(out_dtype).itemsize)

    def build(single_buffer_constants):
        # Grid-constant operands are DMA'd once; single-buffering them halves
        # their VMEM footprint (most valuable on v7x's 64 MiB VMEM).
        const_mode = (dict(pipeline_mode=pl.Buffered(1))
                      if single_buffer_constants else {})
        grid_spec = pltpu.PrefetchScalarGridSpec(
            num_scalar_prefetch=0,
            grid=(B, head_size, nq),
            in_specs=[
                # x: re-DMA'd only when the batch index changes.
                pl.BlockSpec((1, S, H), lambda b, h, q: (b, 0, 0)),
                pl.BlockSpec((head_size, H, inner_dim),
                             lambda b, h, q: (0, 0, 0), **const_mode),        # Wq (all heads)
                pl.BlockSpec((head_size * inner_dim, H),
                             lambda b, h, q: (0, 0), **const_mode),           # Wk (all heads, fused, transposed)
                pl.BlockSpec((head_size, 1, inner_dim),
                             lambda b, h, q: (0, 0, 0), **const_mode),        # bq
                pl.BlockSpec((head_size * inner_dim, 1),
                             lambda b, h, q: (0, 0), **const_mode),           # bk (column)
                pl.BlockSpec((S, inner_dim), lambda b, h, q: (0, 0), **const_mode),   # signed sin (q layout)
                pl.BlockSpec((S, inner_dim), lambda b, h, q: (0, 0), **const_mode),   # cos        (q layout)
                pl.BlockSpec((inner_dim, S), lambda b, h, q: (0, 0), **const_mode),   # signed sin (k layout)
                pl.BlockSpec((inner_dim, S), lambda b, h, q: (0, 0), **const_mode),   # cos        (k layout)
                pl.BlockSpec((1, 1, S), lambda b, h, q: (b, 0, 0)),           # padding mask
            ],
            out_specs=pl.BlockSpec((1, 1, tq, S), lambda b, h, q: (b, h, q, 0)),
            scratch_shapes=[pltpu.VMEM((head_size, inner_dim, S), jnp.bfloat16)],
        )
        return pl.pallas_call(
            kernel,
            out_shape=jax.ShapeDtypeStruct((B, head_size, S, S), out_dtype),
            grid_spec=grid_spec,
            # The head axis must stay "arbitrary": the all-head kw cache is
            # written at h == 0 and reused by later heads on the same core.
            # Batch is the megacore-parallel axis (v7x wants B >= 2).
            compiler_params=pltpu.CompilerParams(
                dimension_semantics=("parallel", "arbitrary", "arbitrary"),
                vmem_limit_bytes=vmem_limit),
            cost_estimate=pl.CostEstimate(flops=flops, transcendentals=0,
                                          bytes_accessed=bytes_accessed),
        )

    args = (x_b, wq_b, wk_b, bq, bk_t, sin_q, cos_q, sin_k, cos_k, mask3)
    try:
        return build(True)(*args)
    except Exception:
        # Older jax without BlockSpec.pipeline_mode / Buffered(1) support:
        # fall back to default double-buffered constants (correctness is
        # unaffected; only the constant-input VMEM footprint grows).
        return build(False)(*args)


def global_pointer_reference(sequence_output, mask, weight, bias, *,
                             head_size, inner_dim):
    """Pure-JAX mirror of the PyTorch forward, for correctness checking."""
    B, S, H = sequence_output.shape
    outputs = sequence_output @ weight + bias                          # (B, S, head*2*inner)
    outputs = outputs.reshape(B, S, head_size, 2 * inner_dim)
    qw, kw = outputs[..., :inner_dim], outputs[..., inner_dim:]

    pos = jnp.arange(S, dtype=jnp.float32)
    idx = jnp.arange(inner_dim // 2, dtype=jnp.float32)
    freqs = jnp.power(10000.0, -2.0 * idx / inner_dim)
    ang = pos[:, None] * freqs[None, :]
    cos_pos = jnp.repeat(jnp.cos(ang), 2, axis=-1)[None, :, None, :]
    sin_pos = jnp.repeat(jnp.sin(ang), 2, axis=-1)[None, :, None, :]

    def rope(v):
        tran = jnp.stack([-v[..., 1::2], v[..., ::2]], axis=-1).reshape(v.shape)
        return v * cos_pos + tran * sin_pos

    qw = rope(qw)
    kw = rope(kw)
    logits = jnp.einsum('bmhd,bnhd->bhmn', qw, kw)
    pad = mask[:, None, None, :]
    logits = logits * pad - (1.0 - pad) * BIG_NEG
    tril = jnp.tril(jnp.ones_like(logits), -1)
    logits = logits - tril * BIG_NEG
    return logits / (inner_dim ** 0.5)


if __name__ == "__main__":
    # Small, deterministic shapes.
    B, S, H = 2, 8, 32
    HEAD, INNER = 4, 32

    key = jax.random.PRNGKey(0)
    k_x, k_w, k_b = jax.random.split(key, 3)

    x = jax.random.normal(k_x, (B, S, H), dtype=jnp.float32)
    # Deterministic synthetic Linear parameters (hidden -> head*inner*2).
    weight = jax.random.normal(k_w, (H, HEAD * INNER * 2), dtype=jnp.float32) * 0.05
    bias = jax.random.normal(k_b, (HEAD * INNER * 2,), dtype=jnp.float32) * 0.01

    # Padding mask: first batch fully valid, second batch last 3 tokens padded.
    mask = jnp.stack([
        jnp.ones((S,), jnp.float32),
        jnp.concatenate([jnp.ones((S - 3,), jnp.float32), jnp.zeros((3,), jnp.float32)]),
    ], axis=0)

    out = global_pointer_forward(x, mask, weight, bias,
                                 head_size=HEAD, inner_dim=INNER)
    out = jax.block_until_ready(out)

    ref = global_pointer_reference(x, mask, weight, bias,
                                   head_size=HEAD, inner_dim=INNER)
    assert out.shape == (B, HEAD, S, S)
    assert jnp.allclose(out, ref, rtol=2e-5, atol=1e-2), "mismatch vs reference"

    print("KERNEL_OK")
</pallas_src>

<mosaic_0001>
module attributes {stable_mosaic.version = 11 : i64} {
  func.func @_global_pointer_kernel(%arg0: i32, %arg1: i32, %arg2: i32, %arg3: memref<1x8x32xbf16, #tpu.memory_space<vmem>>, %arg4: memref<4x32x32xbf16, #tpu.memory_space<vmem>>, %arg5: memref<128x32xbf16, #tpu.memory_space<vmem>>, %arg6: memref<4x1x32xf32, #tpu.memory_space<vmem>>, %arg7: memref<128x1xf32, #tpu.memory_space<vmem>>, %arg8: memref<8x32xbf16, #tpu.memory_space<vmem>>, %arg9: memref<8x32xbf16, #tpu.memory_space<vmem>>, %arg10: memref<32x8xbf16, #tpu.memory_space<vmem>>, %arg11: memref<32x8xbf16, #tpu.memory_space<vmem>>, %arg12: memref<1x1x8xf32, #tpu.memory_space<vmem>>, %arg13: memref<1x1x8x8xf32, #tpu.memory_space<vmem>>, %arg14: memref<4x32x8xbf16, #tpu.memory_space<vmem>>) attributes {dimension_semantics = [#tpu.dimension_semantics<parallel>, #tpu.dimension_semantics<arbitrary>, #tpu.dimension_semantics<arbitrary>], iteration_bounds = array<i64: 2, 4, 1>, scalar_prefetch = 0 : i64, scratch_operands = 1 : i64, tpu.core_type = #tpu.core_type<tc>, window_params = [{transform_indices = @transform_0, window_bounds = array<i64: 1, 8, 32>}, {pipeline_mode = #tpu.pipeline_mode<synchronous>, transform_indices = @transform_1, window_bounds = array<i64: 4, 32, 32>}, {pipeline_mode = #tpu.pipeline_mode<synchronous>, transform_indices = @transform_2, window_bounds = array<i64: 128, 32>}, {pipeline_mode = #tpu.pipeline_mode<synchronous>, transform_indices = @transform_3, window_bounds = array<i64: 4, 1, 32>}, {pipeline_mode = #tpu.pipeline_mode<synchronous>, transform_indices = @transform_4, window_bounds = array<i64: 128, 1>}, {pipeline_mode = #tpu.pipeline_mode<synchronous>, transform_indices = @transform_5, window_bounds = array<i64: 8, 32>}, {pipeline_mode = #tpu.pipeline_mode<synchronous>, transform_indices = @transform_6, window_bounds = array<i64: 8, 32>}, {pipeline_mode = #tpu.pipeline_mode<synchronous>, transform_indices = @transform_7, window_bounds = array<i64: 32, 8>}, {pipeline_mode = #tpu.pipeline_mode<synchronous>, transform_indices = @transform_8, window_bounds = array<i64: 32, 8>}, {transform_indices = @transform_9, window_bounds = array<i64: 1, 1, 8>}, {transform_indices = @transform_10, window_bounds = array<i64: 1, 1, 8, 8>}]} {
    %c0_i32 = arith.constant 0 : i32
    %0 = arith.cmpi eq, %arg1, %c0_i32 : i32
    %c0_i32_0 = arith.constant 0 : i32
    %1 = arith.cmpi eq, %arg2, %c0_i32_0 : i32
    %2 = arith.andi %0, %1 : i1
    %3 = arith.extui %2 : i1 to i32
    %c0_i32_1 = arith.constant 0 : i32
    %4 = arith.cmpi ne, %3, %c0_i32_1 : i32
    scf.if %4 {
      %c0_23 = arith.constant 0 : index
      %c0_24 = arith.constant 0 : index
      %c0_25 = arith.constant 0 : index
      %56 = vector.load %arg3[%c0_23, %c0_24, %c0_25] : memref<1x8x32xbf16, #tpu.memory_space<vmem>>, vector<1x8x32xbf16>
      %57 = vector.shape_cast %56 : vector<1x8x32xbf16> to vector<8x32xbf16>
      %c0_26 = arith.constant 0 : index
      %c0_27 = arith.constant 0 : index
      %58 = vector.load %arg5[%c0_26, %c0_27] : memref<128x32xbf16, #tpu.memory_space<vmem>>, vector<128x32xbf16>
      %cst_28 = arith.constant dense<0.000000e+00> : vector<128x8xf32>
      %59 = tpu.matmul %58, %57, %cst_28 {dimension_numbers = #tpu.dot_dimension_numbers<[1], [1], [0], [0], [0, 0, 1, 0], [], []>} : vector<128x32xbf16>, vector<8x32xbf16>, vector<128x8xf32> -> vector<128x8xf32>
      %c0_29 = arith.constant 0 : index
      %c0_30 = arith.constant 0 : index
      %60 = vector.load %arg7[%c0_29, %c0_30] : memref<128x1xf32, #tpu.memory_space<vmem>>, vector<128x1xf32>
      %61 = vector.broadcast %60 : vector<128x1xf32> to vector<128x8xf32>
      %62 = arith.addf %59, %61 : vector<128x8xf32>
      %63 = vector.extract_strided_slice %62 {offsets = [0, 0], sizes = [32, 8], strides = [1, 1]} : vector<128x8xf32> to vector<32x8xf32>
      %c0_31 = arith.constant 0 : index
      %c0_32 = arith.constant 0 : index
      %64 = vector.load %arg11[%c0_31, %c0_32] : memref<32x8xbf16, #tpu.memory_space<vmem>>, vector<32x8xbf16>
      %65 = arith.extf %64 : vector<32x8xbf16> to vector<32x8xf32>
      %66 = arith.mulf %63, %65 : vector<32x8xf32>
      %c16_i32_33 = arith.constant 16 : i32
      %67 = tpu.dynamic_rotate %63 by %c16_i32_33 dim 0 : vector<32x8xf32>, i32 -> vector<32x8xf32>
      %c0_34 = arith.constant 0 : index
      %c0_35 = arith.constant 0 : index
      %68 = vector.load %arg10[%c0_34, %c0_35] : memref<32x8xbf16, #tpu.memory_space<vmem>>, vector<32x8xbf16>
      %69 = arith.extf %68 : vector<32x8xbf16> to vector<32x8xf32>
      %70 = arith.mulf %67, %69 : vector<32x8xf32>
      %71 = arith.addf %66, %70 : vector<32x8xf32>
      %72 = arith.truncf %71 : vector<32x8xf32> to vector<32x8xbf16>
      %c0_36 = arith.constant 0 : index
      %c0_37 = arith.constant 0 : index
      %c0_38 = arith.constant 0 : index
      %73 = vector.load %arg14[%c0_36, %c0_37, %c0_38] : memref<4x32x8xbf16, #tpu.memory_space<vmem>>, vector<1x32x8xbf16>
      %74 = vector.shape_cast %73 : vector<1x32x8xbf16> to vector<32x8xbf16>
      %75 = vector.shape_cast %72 : vector<32x8xbf16> to vector<1x32x8xbf16>
      tpu.vector_store %arg14[%c0_36, %c0_37, %c0_38], %75 {strides = array<i32>} : memref<4x32x8xbf16, #tpu.memory_space<vmem>>, vector<1x32x8xbf16>,
      %76 = vector.extract_strided_slice %62 {offsets = [32, 0], sizes = [32, 8], strides = [1, 1]} : vector<128x8xf32> to vector<32x8xf32>
      %c0_39 = arith.constant 0 : index
      %c0_40 = arith.constant 0 : index
      %77 = vector.load %arg11[%c0_39, %c0_40] : memref<32x8xbf16, #tpu.memory_space<vmem>>, vector<32x8xbf16>
      %78 = arith.extf %77 : vector<32x8xbf16> to vector<32x8xf32>
      %79 = arith.mulf %76, %78 : vector<32x8xf32>
      %c16_i32_41 = arith.constant 16 : i32
      %80 = tpu.dynamic_rotate %76 by %c16_i32_41 dim 0 : vector<32x8xf32>, i32 -> vector<32x8xf32>
      %c0_42 = arith.constant 0 : index
      %c0_43 = arith.constant 0 : index
      %81 = vector.load %arg10[%c0_42, %c0_43] : memref<32x8xbf16, #tpu.memory_space<vmem>>, vector<32x8xbf16>
      %82 = arith.extf %81 : vector<32x8xbf16> to vector<32x8xf32>
      %83 = arith.mulf %80, %82 : vector<32x8xf32>
      %84 = arith.addf %79, %83 : vector<32x8xf32>
      %85 = arith.truncf %84 : vector<32x8xf32> to vector<32x8xbf16>
      %c1 = arith.constant 1 : index
      %c0_44 = arith.constant 0 : index
      %c0_45 = arith.constant 0 : index
      %86 = vector.load %arg14[%c1, %c0_44, %c0_45] : memref<4x32x8xbf16, #tpu.memory_space<vmem>>, vector<1x32x8xbf16>
      %87 = vector.shape_cast %86 : vector<1x32x8xbf16> to vector<32x8xbf16>
      %88 = vector.shape_cast %85 : vector<32x8xbf16> to vector<1x32x8xbf16>
      tpu.vector_store %arg14[%c1, %c0_44, %c0_45], %88 {strides = array<i32>} : memref<4x32x8xbf16, #tpu.memory_space<vmem>>, vector<1x32x8xbf16>,
      %89 = vector.extract_strided_slice %62 {offsets = [64, 0], sizes = [32, 8], strides = [1, 1]} : vector<128x8xf32> to vector<32x8xf32>
      %c0_46 = arith.constant 0 : index
      %c0_47 = arith.constant 0 : index
      %90 = vector.load %arg11[%c0_46, %c0_47] : memref<32x8xbf16, #tpu.memory_space<vmem>>, vector<32x8xbf16>
      %91 = arith.extf %90 : vector<32x8xbf16> to vector<32x8xf32>
      %92 = arith.mulf %89, %91 : vector<32x8xf32>
      %c16_i32_48 = arith.constant 16 : i32
      %93 = tpu.dynamic_rotate %89 by %c16_i32_48 dim 0 : vector<32x8xf32>, i32 -> vector<32x8xf32>
      %c0_49 = arith.constant 0 : index
      %c0_50 = arith.constant 0 : index
      %94 = vector.load %arg10[%c0_49, %c0_50] : memref<32x8xbf16, #tpu.memory_space<vmem>>, vector<32x8xbf16>
      %95 = arith.extf %94 : vector<32x8xbf16> to vector<32x8xf32>
      %96 = arith.mulf %93, %95 : vector<32x8xf32>
      %97 = arith.addf %92, %96 : vector<32x8xf32>
      %98 = arith.truncf %97 : vector<32x8xf32> to vector<32x8xbf16>
      %c2 = arith.constant 2 : index
      %c0_51 = arith.constant 0 : index
      %c0_52 = arith.constant 0 : index
      %99 = vector.load %arg14[%c2, %c0_51, %c0_52] : memref<4x32x8xbf16, #tpu.memory_space<vmem>>, vector<1x32x8xbf16>
      %100 = vector.shape_cast %99 : vector<1x32x8xbf16> to vector<32x8xbf16>
      %101 = vector.shape_cast %98 : vector<32x8xbf16> to vector<1x32x8xbf16>
      tpu.vector_store %arg14[%c2, %c0_51, %c0_52], %101 {strides = array<i32>} : memref<4x32x8xbf16, #tpu.memory_space<vmem>>, vector<1x32x8xbf16>,
      %102 = vector.extract_strided_slice %62 {offsets = [96, 0], sizes = [32, 8], strides = [1, 1]} : vector<128x8xf32> to vector<32x8xf32>
      %c0_53 = arith.constant 0 : index
      %c0_54 = arith.constant 0 : index
      %103 = vector.load %arg11[%c0_53, %c0_54] : memref<32x8xbf16, #tpu.memory_space<vmem>>, vector<32x8xbf16>
      %104 = arith.extf %103 : vector<32x8xbf16> to vector<32x8xf32>
      %105 = arith.mulf %102, %104 : vector<32x8xf32>
      %c16_i32_55 = arith.constant 16 : i32
      %106 = tpu.dynamic_rotate %102 by %c16_i32_55 dim 0 : vector<32x8xf32>, i32 -> vector<32x8xf32>
      %c0_56 = arith.constant 0 : index
      %c0_57 = arith.constant 0 : index
      %107 = vector.load %arg10[%c0_56, %c0_57] : memref<32x8xbf16, #tpu.memory_space<vmem>>, vector<32x8xbf16>
      %108 = arith.extf %107 : vector<32x8xbf16> to vector<32x8xf32>
      %109 = arith.mulf %106, %108 : vector<32x8xf32>
      %110 = arith.addf %105, %109 : vector<32x8xf32>
      %111 = arith.truncf %110 : vector<32x8xf32> to vector<32x8xbf16>
      %c3 = arith.constant 3 : index
      %c0_58 = arith.constant 0 : index
      %c0_59 = arith.constant 0 : index
      %112 = vector.load %arg14[%c3, %c0_58, %c0_59] : memref<4x32x8xbf16, #tpu.memory_space<vmem>>, vector<1x32x8xbf16>
      %113 = vector.shape_cast %112 : vector<1x32x8xbf16> to vector<32x8xbf16>
      %114 = vector.shape_cast %111 : vector<32x8xbf16> to vector<1x32x8xbf16>
      tpu.vector_store %arg14[%c3, %c0_58, %c0_59], %114 {strides = array<i32>} : memref<4x32x8xbf16, #tpu.memory_space<vmem>>, vector<1x32x8xbf16>,
    } else {
    }
    %c8_i32 = arith.constant 8 : i32
    %5 = arith.muli %arg2, %c8_i32 : i32
    %6 = tpu.assume_multiple %5, 8 : i32
    %c0 = arith.constant 0 : index
    %7 = arith.index_cast %6 : i32 to index
    %c0_2 = arith.constant 0 : index
    %8 = vector.load %arg3[%c0, %7, %c0_2] : memref<1x8x32xbf16, #tpu.memory_space<vmem>>, vector<1x8x32xbf16>
    %9 = vector.shape_cast %8 : vector<1x8x32xbf16> to vector<8x32xbf16>
    %10 = arith.index_cast %arg1 : i32 to index
    %c0_3 = arith.constant 0 : index
    %c0_4 = arith.constant 0 : index
    %11 = vector.load %arg4[%10, %c0_3, %c0_4] : memref<4x32x32xbf16, #tpu.memory_space<vmem>>, vector<1x32x32xbf16>
    %12 = vector.shape_cast %11 : vector<1x32x32xbf16> to vector<32x32xbf16>
    %cst = arith.constant dense<0.000000e+00> : vector<8x32xf32>
    %13 = tpu.matmul %9, %12, %cst {dimension_numbers = #tpu.dot_dimension_numbers<[1], [0], [0], [1], [0, 0, 1, 1], [], []>} : vector<8x32xbf16>, vector<32x32xbf16>, vector<8x32xf32> -> vector<8x32xf32>
    %14 = arith.index_cast %arg1 : i32 to index
    %c0_5 = arith.constant 0 : index
    %c0_6 = arith.constant 0 : index
    %15 = vector.load %arg6[%14, %c0_5, %c0_6] : memref<4x1x32xf32, #tpu.memory_space<vmem>>, vector<1x1x32xf32>
    %16 = vector.shape_cast %15 : vector<1x1x32xf32> to vector<1x32xf32>
    %17 = vector.broadcast %16 : vector<1x32xf32> to vector<8x32xf32>
    %18 = arith.addf %13, %17 : vector<8x32xf32>
    %19 = arith.index_cast %6 : i32 to index
    %c0_7 = arith.constant 0 : index
    %20 = vector.load %arg9[%19, %c0_7] : memref<8x32xbf16, #tpu.memory_space<vmem>>, vector<8x32xbf16>
    %21 = arith.extf %20 : vector<8x32xbf16> to vector<8x32xf32>
    %22 = arith.mulf %18, %21 : vector<8x32xf32>
    %c16_i32 = arith.constant 16 : i32
    %23 = tpu.dynamic_rotate %18 by %c16_i32 dim 1 : vector<8x32xf32>, i32 -> vector<8x32xf32>
    %24 = arith.index_cast %6 : i32 to index
    %c0_8 = arith.constant 0 : index
    %25 = vector.load %arg8[%24, %c0_8] : memref<8x32xbf16, #tpu.memory_space<vmem>>, vector<8x32xbf16>
    %26 = arith.extf %25 : vector<8x32xbf16> to vector<8x32xf32>
    %27 = arith.mulf %23, %26 : vector<8x32xf32>
    %28 = arith.addf %22, %27 : vector<8x32xf32>
    %29 = arith.truncf %28 : vector<8x32xf32> to vector<8x32xbf16>
    %30 = arith.index_cast %arg1 : i32 to index
    %c0_9 = arith.constant 0 : index
    %c0_10 = arith.constant 0 : index
    %31 = vector.load %arg14[%30, %c0_9, %c0_10] : memref<4x32x8xbf16, #tpu.memory_space<vmem>>, vector<1x32x8xbf16>
    %32 = vector.shape_cast %31 : vector<1x32x8xbf16> to vector<32x8xbf16>
    %cst_11 = arith.constant dense<0.000000e+00> : vector<8x8xf32>
    %33 = tpu.matmul %29, %32, %cst_11 {dimension_numbers = #tpu.dot_dimension_numbers<[1], [0], [0], [1], [0, 0, 1, 1], [], []>} : vector<8x32xbf16>, vector<32x8xbf16>, vector<8x8xf32> -> vector<8x8xf32>
    %c0_12 = arith.constant 0 : index
    %c0_13 = arith.constant 0 : index
    %c0_14 = arith.constant 0 : index
    %34 = vector.load %arg12[%c0_12, %c0_13, %c0_14] : memref<1x1x8xf32, #tpu.memory_space<vmem>>, vector<1x1x8xf32>
    %35 = vector.shape_cast %34 : vector<1x1x8xf32> to vector<1x8xf32>
    %cst_15 = arith.constant 1.000000e+00 : f32
    %36 = vector.broadcast %cst_15 : f32 to vector<1x8xf32>
    %37 = arith.subf %35, %36 : vector<1x8xf32>
    %cst_16 = arith.constant 1.76776692E+11 : f32
    %38 = vector.broadcast %cst_16 : f32 to vector<1x8xf32>
    %39 = arith.mulf %37, %38 : vector<1x8xf32>
    %40 = tpu.iota {dimensions = array<i32: 0>} : vector<8x8xi32>
    %41 = vector.broadcast %6 : i32 to vector<8x8xi32>
    %42 = arith.addi %41, %40 : vector<8x8xi32>
    %43 = tpu.iota {dimensions = array<i32: 1>} : vector<8x8xi32>
    %44 = arith.cmpi sgt, %42, %43 : vector<8x8xi32>
    %cst_17 = arith.constant -1.76776692E+11 : f32
    %cst_18 = arith.constant 0.000000e+00 : f32
    %45 = vector.broadcast %cst_17 : f32 to vector<8x8xf32>
    %46 = vector.broadcast %cst_18 : f32 to vector<8x8xf32>
    %47 = arith.select %44, %45, %46 : vector<8x8xi1>, vector<8x8xf32>
    %48 = vector.broadcast %35 : vector<1x8xf32> to vector<8x8xf32>
    %49 = arith.mulf %33, %48 : vector<8x8xf32>
    %50 = vector.broadcast %39 : vector<1x8xf32> to vector<8x8xf32>
    %51 = arith.addf %49, %50 : vector<8x8xf32>
    %52 = arith.addf %51, %47 : vector<8x8xf32>
    %c0_19 = arith.constant 0 : index
    %c0_20 = arith.constant 0 : index
    %c0_21 = arith.constant 0 : index
    %c0_22 = arith.constant 0 : index
    %53 = vector.load %arg13[%c0_19, %c0_20, %c0_21, %c0_22] : memref<1x1x8x8xf32, #tpu.memory_space<vmem>>, vector<1x1x8x8xf32>
    %54 = vector.shape_cast %53 : vector<1x1x8x8xf32> to vector<8x8xf32>
    %55 = vector.shape_cast %52 : vector<8x8xf32> to vector<1x1x8x8xf32>
    tpu.vector_store %arg13[%c0_19, %c0_20, %c0_21, %c0_22], %55 {strides = array<i32>} : memref<1x1x8x8xf32, #tpu.memory_space<vmem>>, vector<1x1x8x8xf32>,
    return
  }
  func.func @transform_0(%arg0: i32, %arg1: i32, %arg2: i32) -> (i32, i32, i32) {
    %c0_i32 = arith.constant 0 : i32
    %c0_i32_0 = arith.constant 0 : i32
    %c0_i32_1 = arith.constant 0 : i32
    return %arg0, %c0_i32, %c0_i32_0 : i32, i32, i32
  }
  func.func @transform_1(%arg0: i32, %arg1: i32, %arg2: i32) -> (i32, i32, i32) {
    %c0_i32 = arith.constant 0 : i32
    %c0_i32_0 = arith.constant 0 : i32
    %c0_i32_1 = arith.constant 0 : i32
    %c0_i32_2 = arith.constant 0 : i32
    return %c0_i32, %c0_i32_0, %c0_i32_1 : i32, i32, i32
  }
  func.func @transform_2(%arg0: i32, %arg1: i32, %arg2: i32) -> (i32, i32) {
    %c0_i32 = arith.constant 0 : i32
    %c0_i32_0 = arith.constant 0 : i32
    %c0_i32_1 = arith.constant 0 : i32
    return %c0_i32, %c0_i32_0 : i32, i32
  }
  func.func @transform_3(%arg0: i32, %arg1: i32, %arg2: i32) -> (i32, i32, i32) {
    %c0_i32 = arith.constant 0 : i32
    %c0_i32_0 = arith.constant 0 : i32
    %c0_i32_1 = arith.constant 0 : i32
    %c0_i32_2 = arith.constant 0 : i32
    return %c0_i32, %c0_i32_0, %c0_i32_1 : i32, i32, i32
  }
  func.func @transform_4(%arg0: i32, %arg1: i32, %arg2: i32) -> (i32, i32) {
    %c0_i32 = arith.constant 0 : i32
    %c0_i32_0 = arith.constant 0 : i32
    %c0_i32_1 = arith.constant 0 : i32
    return %c0_i32, %c0_i32_0 : i32, i32
  }
  func.func @transform_5(%arg0: i32, %arg1: i32, %arg2: i32) -> (i32, i32) {
    %c0_i32 = arith.constant 0 : i32
    %c0_i32_0 = arith.constant 0 : i32
    %c0_i32_1 = arith.constant 0 : i32
    return %c0_i32, %c0_i32_0 : i32, i32
  }
  func.func @transform_6(%arg0: i32, %arg1: i32, %arg2: i32) -> (i32, i32) {
    %c0_i32 = arith.constant 0 : i32
    %c0_i32_0 = arith.constant 0 : i32
    %c0_i32_1 = arith.constant 0 : i32
    return %c0_i32, %c0_i32_0 : i32, i32
  }
  func.func @transform_7(%arg0: i32, %arg1: i32, %arg2: i32) -> (i32, i32) {
    %c0_i32 = arith.constant 0 : i32
    %c0_i32_0 = arith.constant 0 : i32
    %c0_i32_1 = arith.constant 0 : i32
    return %c0_i32, %c0_i32_0 : i32, i32
  }
  func.func @transform_8(%arg0: i32, %arg1: i32, %arg2: i32) -> (i32, i32) {
    %c0_i32 = arith.constant 0 : i32
    %c0_i32_0 = arith.constant 0 : i32
    %c0_i32_1 = arith.constant 0 : i32
    return %c0_i32, %c0_i32_0 : i32, i32
  }
  func.func @transform_9(%arg0: i32, %arg1: i32, %arg2: i32) -> (i32, i32, i32) {
    %c0_i32 = arith.constant 0 : i32
    %c0_i32_0 = arith.constant 0 : i32
    %c0_i32_1 = arith.constant 0 : i32
    return %arg0, %c0_i32, %c0_i32_0 : i32, i32, i32
  }
  func.func @transform_10(%arg0: i32, %arg1: i32, %arg2: i32) -> (i32, i32, i32, i32) {
    %c0_i32 = arith.constant 0 : i32
    %c0_i32_0 = arith.constant 0 : i32
    return %arg0, %arg1, %arg2, %c0_i32 : i32, i32, i32, i32
  }
}

module attributes {stable_mosaic.version = 11 : i64} {
  func.func @_global_pointer_kernel(%arg0: i32, %arg1: i32, %arg2: i32, %arg3: memref<1x8x32xbf16, #tpu.memory_space<vmem>>, %arg4: memref<4x32x32xbf16, #tpu.memory_space<vmem>>, %arg5: memref<128x32xbf16, #tpu.memory_space<vmem>>, %arg6: memref<4x1x32xf32, #tpu.memory_space<vmem>>, %arg7: memref<128x1xf32, #tpu.memory_space<vmem>>, %arg8: memref<8x32xbf16, #tpu.memory_space<vmem>>, %arg9: memref<8x32xbf16, #tpu.memory_space<vmem>>, %arg10: memref<32x8xbf16, #tpu.memory_space<vmem>>, %arg11: memref<32x8xbf16, #tpu.memory_space<vmem>>, %arg12: memref<1x1x8xf32, #tpu.memory_space<vmem>>, %arg13: memref<1x1x8x8xf32, #tpu.memory_space<vmem>>, %arg14: memref<4x32x8xbf16, #tpu.memory_space<vmem>>) attributes {dimension_semantics = [#tpu.dimension_semantics<parallel>, #tpu.dimension_semantics<arbitrary>, #tpu.dimension_semantics<arbitrary>], iteration_bounds = array<i64: 2, 4, 1>, scalar_prefetch = 0 : i64, scratch_operands = 1 : i64, tpu.core_type = #tpu.core_type<tc>, window_params = [{transform_indices = @transform_0, window_bounds = array<i64: 1, 8, 32>}, {pipeline_mode = #tpu.pipeline_mode<synchronous>, transform_indices = @transform_1, window_bounds = array<i64: 4, 32, 32>}, {pipeline_mode = #tpu.pipeline_mode<synchronous>, transform_indices = @transform_2, window_bounds = array<i64: 128, 32>}, {pipeline_mode = #tpu.pipeline_mode<synchronous>, transform_indices = @transform_3, window_bounds = array<i64: 4, 1, 32>}, {pipeline_mode = #tpu.pipeline_mode<synchronous>, transform_indices = @transform_4, window_bounds = array<i64: 128, 1>}, {pipeline_mode = #tpu.pipeline_mode<synchronous>, transform_indices = @transform_5, window_bounds = array<i64: 8, 32>}, {pipeline_mode = #tpu.pipeline_mode<synchronous>, transform_indices = @transform_6, window_bounds = array<i64: 8, 32>}, {pipeline_mode = #tpu.pipeline_mode<synchronous>, transform_indices = @transform_7, window_bounds = array<i64: 32, 8>}, {pipeline_mode = #tpu.pipeline_mode<synchronous>, transform_indices = @transform_8, window_bounds = array<i64: 32, 8>}, {transform_indices = @transform_9, window_bounds = array<i64: 1, 1, 8>}, {transform_indices = @transform_10, window_bounds = array<i64: 1, 1, 8, 8>}]} {
    %c0_i32 = arith.constant 0 : i32
    %0 = arith.cmpi eq, %arg1, %c0_i32 : i32
    %c0_i32_0 = arith.constant 0 : i32
    %1 = arith.cmpi eq, %arg2, %c0_i32_0 : i32
    %2 = arith.andi %0, %1 : i1
    %3 = arith.extui %2 : i1 to i32
    %c0_i32_1 = arith.constant 0 : i32
    %4 = arith.cmpi ne, %3, %c0_i32_1 : i32
    scf.if %4 {
      %c0_23 = arith.constant 0 : index
      %c0_24 = arith.constant 0 : index
      %c0_25 = arith.constant 0 : index
      %56 = vector.load %arg3[%c0_23, %c0_24, %c0_25] : memref<1x8x32xbf16, #tpu.memory_space<vmem>>, vector<1x8x32xbf16>
      %57 = vector.shape_cast %56 : vector<1x8x32xbf16> to vector<8x32xbf16>
      %c0_26 = arith.constant 0 : index
      %c0_27 = arith.constant 0 : index
      %58 = vector.load %arg5[%c0_26, %c0_27] : memref<128x32xbf16, #tpu.memory_space<vmem>>, vector<128x32xbf16>
      %cst_28 = arith.constant dense<0.000000e+00> : vector<128x8xf32>
      %59 = tpu.matmul %58, %57, %cst_28 {dimension_numbers = #tpu.dot_dimension_numbers<[1], [1], [0], [0], [0, 0, 1, 0], [], []>} : vector<128x32xbf16>, vector<8x32xbf16>, vector<128x8xf32> -> vector<128x8xf32>
      %c0_29 = arith.constant 0 : index
      %c0_30 = arith.constant 0 : index
      %60 = vector.load %arg7[%c0_29, %c0_30] : memref<128x1xf32, #tpu.memory_space<vmem>>, vector<128x1xf32>
      %61 = vector.broadcast %60 : vector<128x1xf32> to vector<128x8xf32>
      %62 = arith.addf %59, %61 : vector<128x8xf32>
      %63 = vector.extract_strided_slice %62 {offsets = [0, 0], sizes = [32, 8], strides = [1, 1]} : vector<128x8xf32> to vector<32x8xf32>
      %c0_31 = arith.constant 0 : index
      %c0_32 = arith.constant 0 : index
      %64 = vector.load %arg11[%c0_31, %c0_32] : memref<32x8xbf16, #tpu.memory_space<vmem>>, vector<32x8xbf16>
      %65 = arith.extf %64 : vector<32x8xbf16> to vector<32x8xf32>
      %66 = arith.mulf %63, %65 : vector<32x8xf32>
      %c16_i32_33 = arith.constant 16 : i32
      %67 = tpu.dynamic_rotate %63 by %c16_i32_33 dim 0 : vector<32x8xf32>, i32 -> vector<32x8xf32>
      %c0_34 = arith.constant 0 : index
      %c0_35 = arith.constant 0 : index
      %68 = vector.load %arg10[%c0_34, %c0_35] : memref<32x8xbf16, #tpu.memory_space<vmem>>, vector<32x8xbf16>
      %69 = arith.extf %68 : vector<32x8xbf16> to vector<32x8xf32>
      %70 = arith.mulf %67, %69 : vector<32x8xf32>
      %71 = arith.addf %66, %70 : vector<32x8xf32>
      %72 = arith.truncf %71 : vector<32x8xf32> to vector<32x8xbf16>
      %c0_36 = arith.constant 0 : index
      %c0_37 = arith.constant 0 : index
      %c0_38 = arith.constant 0 : index
      %73 = vector.load %arg14[%c0_36, %c0_37, %c0_38] : memref<4x32x8xbf16, #tpu.memory_space<vmem>>, vector<1x32x8xbf16>
      %74 = vector.shape_cast %73 : vector<1x32x8xbf16> to vector<32x8xbf16>
      %75 = vector.shape_cast %72 : vector<32x8xbf16> to vector<1x32x8xbf16>
      tpu.vector_store %arg14[%c0_36, %c0_37, %c0_38], %75 {strides = array<i32>} : memref<4x32x8xbf16, #tpu.memory_space<vmem>>, vector<1x32x8xbf16>,
      %76 = vector.extract_strided_slice %62 {offsets = [32, 0], sizes = [32, 8], strides = [1, 1]} : vector<128x8xf32> to vector<32x8xf32>
      %c0_39 = arith.constant 0 : index
      %c0_40 = arith.constant 0 : index
      %77 = vector.load %arg11[%c0_39, %c0_40] : memref<32x8xbf16, #tpu.memory_space<vmem>>, vector<32x8xbf16>
      %78 = arith.extf %77 : vector<32x8xbf16> to vector<32x8xf32>
      %79 = arith.mulf %76, %78 : vector<32x8xf32>
      %c16_i32_41 = arith.constant 16 : i32
      %80 = tpu.dynamic_rotate %76 by %c16_i32_41 dim 0 : vector<32x8xf32>, i32 -> vector<32x8xf32>
      %c0_42 = arith.constant 0 : index
      %c0_43 = arith.constant 0 : index
      %81 = vector.load %arg10[%c0_42, %c0_43] : memref<32x8xbf16, #tpu.memory_space<vmem>>, vector<32x8xbf16>
      %82 = arith.extf %81 : vector<32x8xbf16> to vector<32x8xf32>
      %83 = arith.mulf %80, %82 : vector<32x8xf32>
      %84 = arith.addf %79, %83 : vector<32x8xf32>
      %85 = arith.truncf %84 : vector<32x8xf32> to vector<32x8xbf16>
      %c1 = arith.constant 1 : index
      %c0_44 = arith.constant 0 : index
      %c0_45 = arith.constant 0 : index
      %86 = vector.load %arg14[%c1, %c0_44, %c0_45] : memref<4x32x8xbf16, #tpu.memory_space<vmem>>, vector<1x32x8xbf16>
      %87 = vector.shape_cast %86 : vector<1x32x8xbf16> to vector<32x8xbf16>
      %88 = vector.shape_cast %85 : vector<32x8xbf16> to vector<1x32x8xbf16>
      tpu.vector_store %arg14[%c1, %c0_44, %c0_45], %88 {strides = array<i32>} : memref<4x32x8xbf16, #tpu.memory_space<vmem>>, vector<1x32x8xbf16>,
      %89 = vector.extract_strided_slice %62 {offsets = [64, 0], sizes = [32, 8], strides = [1, 1]} : vector<128x8xf32> to vector<32x8xf32>
      %c0_46 = arith.constant 0 : index
      %c0_47 = arith.constant 0 : index
      %90 = vector.load %arg11[%c0_46, %c0_47] : memref<32x8xbf16, #tpu.memory_space<vmem>>, vector<32x8xbf16>
      %91 = arith.extf %90 : vector<32x8xbf16> to vector<32x8xf32>
      %92 = arith.mulf %89, %91 : vector<32x8xf32>
      %c16_i32_48 = arith.constant 16 : i32
      %93 = tpu.dynamic_rotate %89 by %c16_i32_48 dim 0 : vector<32x8xf32>, i32 -> vector<32x8xf32>
      %c0_49 = arith.constant 0 : index
      %c0_50 = arith.constant 0 : index
      %94 = vector.load %arg10[%c0_49, %c0_50] : memref<32x8xbf16, #tpu.memory_space<vmem>>, vector<32x8xbf16>
      %95 = arith.extf %94 : vector<32x8xbf16> to vector<32x8xf32>
      %96 = arith.mulf %93, %95 : vector<32x8xf32>
      %97 = arith.addf %92, %96 : vector<32x8xf32>
      %98 = arith.truncf %97 : vector<32x8xf32> to vector<32x8xbf16>
      %c2 = arith.constant 2 : index
      %c0_51 = arith.constant 0 : index
      %c0_52 = arith.constant 0 : index
      %99 = vector.load %arg14[%c2, %c0_51, %c0_52] : memref<4x32x8xbf16, #tpu.memory_space<vmem>>, vector<1x32x8xbf16>
      %100 = vector.shape_cast %99 : vector<1x32x8xbf16> to vector<32x8xbf16>
      %101 = vector.shape_cast %98 : vector<32x8xbf16> to vector<1x32x8xbf16>
      tpu.vector_store %arg14[%c2, %c0_51, %c0_52], %101 {strides = array<i32>} : memref<4x32x8xbf16, #tpu.memory_space<vmem>>, vector<1x32x8xbf16>,
      %102 = vector.extract_strided_slice %62 {offsets = [96, 0], sizes = [32, 8], strides = [1, 1]} : vector<128x8xf32> to vector<32x8xf32>
      %c0_53 = arith.constant 0 : index
      %c0_54 = arith.constant 0 : index
      %103 = vector.load %arg11[%c0_53, %c0_54] : memref<32x8xbf16, #tpu.memory_space<vmem>>, vector<32x8xbf16>
      %104 = arith.extf %103 : vector<32x8xbf16> to vector<32x8xf32>
      %105 = arith.mulf %102, %104 : vector<32x8xf32>
      %c16_i32_55 = arith.constant 16 : i32
      %106 = tpu.dynamic_rotate %102 by %c16_i32_55 dim 0 : vector<32x8xf32>, i32 -> vector<32x8xf32>
      %c0_56 = arith.constant 0 : index
      %c0_57 = arith.constant 0 : index
      %107 = vector.load %arg10[%c0_56, %c0_57] : memref<32x8xbf16, #tpu.memory_space<vmem>>, vector<32x8xbf16>
      %108 = arith.extf %107 : vector<32x8xbf16> to vector<32x8xf32>
      %109 = arith.mulf %106, %108 : vector<32x8xf32>
      %110 = arith.addf %105, %109 : vector<32x8xf32>
      %111 = arith.truncf %110 : vector<32x8xf32> to vector<32x8xbf16>
      %c3 = arith.constant 3 : index
      %c0_58 = arith.constant 0 : index
      %c0_59 = arith.constant 0 : index
      %112 = vector.load %arg14[%c3, %c0_58, %c0_59] : memref<4x32x8xbf16, #tpu.memory_space<vmem>>, vector<1x32x8xbf16>
      %113 = vector.shape_cast %112 : vector<1x32x8xbf16> to vector<32x8xbf16>
      %114 = vector.shape_cast %111 : vector<32x8xbf16> to vector<1x32x8xbf16>
      tpu.vector_store %arg14[%c3, %c0_58, %c0_59], %114 {strides = array<i32>} : memref<4x32x8xbf16, #tpu.memory_space<vmem>>, vector<1x32x8xbf16>,
    } else {
    }
    %c8_i32 = arith.constant 8 : i32
    %5 = arith.muli %arg2, %c8_i32 : i32
    %6 = tpu.assume_multiple %5, 8 : i32
    %c0 = arith.constant 0 : index
    %7 = arith.index_cast %6 : i32 to index
    %c0_2 = arith.constant 0 : index
    %8 = vector.load %arg3[%c0, %7, %c0_2] : memref<1x8x32xbf16, #tpu.memory_space<vmem>>, vector<1x8x32xbf16>
    %9 = vector.shape_cast %8 : vector<1x8x32xbf16> to vector<8x32xbf16>
    %10 = arith.index_cast %arg1 : i32 to index
    %c0_3 = arith.constant 0 : index
    %c0_4 = arith.constant 0 : index
    %11 = vector.load %arg4[%10, %c0_3, %c0_4] : memref<4x32x32xbf16, #tpu.memory_space<vmem>>, vector<1x32x32xbf16>
    %12 = vector.shape_cast %11 : vector<1x32x32xbf16> to vector<32x32xbf16>
    %cst = arith.constant dense<0.000000e+00> : vector<8x32xf32>
    %13 = tpu.matmul %9, %12, %cst {dimension_numbers = #tpu.dot_dimension_numbers<[1], [0], [0], [1], [0, 0, 1, 1], [], []>} : vector<8x32xbf16>, vector<32x32xbf16>, vector<8x32xf32> -> vector<8x32xf32>
    %14 = arith.index_cast %arg1 : i32 to index
    %c0_5 = arith.constant 0 : index
    %c0_6 = arith.constant 0 : index
    %15 = vector.load %arg6[%14, %c0_5, %c0_6] : memref<4x1x32xf32, #tpu.memory_space<vmem>>, vector<1x1x32xf32>
    %16 = vector.shape_cast %15 : vector<1x1x32xf32> to vector<1x32xf32>
    %17 = vector.broadcast %16 : vector<1x32xf32> to vector<8x32xf32>
    %18 = arith.addf %13, %17 : vector<8x32xf32>
    %19 = arith.index_cast %6 : i32 to index
    %c0_7 = arith.constant 0 : index
    %20 = vector.load %arg9[%19, %c0_7] : memref<8x32xbf16, #tpu.memory_space<vmem>>, vector<8x32xbf16>
    %21 = arith.extf %20 : vector<8x32xbf16> to vector<8x32xf32>
    %22 = arith.mulf %18, %21 : vector<8x32xf32>
    %c16_i32 = arith.constant 16 : i32
    %23 = tpu.dynamic_rotate %18 by %c16_i32 dim 1 : vector<8x32xf32>, i32 -> vector<8x32xf32>
    %24 = arith.index_cast %6 : i32 to index
    %c0_8 = arith.constant 0 : index
    %25 = vector.load %arg8[%24, %c0_8] : memref<8x32xbf16, #tpu.memory_space<vmem>>, vector<8x32xbf16>
    %26 = arith.extf %25 : vector<8x32xbf16> to vector<8x32xf32>
    %27 = arith.mulf %23, %26 : vector<8x32xf32>
    %28 = arith.addf %22, %27 : vector<8x32xf32>
    %29 = arith.truncf %28 : vector<8x32xf32> to vector<8x32xbf16>
    %30 = arith.index_cast %arg1 : i32 to index
    %c0_9 = arith.constant 0 : index
    %c0_10 = arith.constant 0 : index
    %31 = vector.load %arg14[%30, %c0_9, %c0_10] : memref<4x32x8xbf16, #tpu.memory_space<vmem>>, vector<1x32x8xbf16>
    %32 = vector.shape_cast %31 : vector<1x32x8xbf16> to vector<32x8xbf16>
    %cst_11 = arith.constant dense<0.000000e+00> : vector<8x8xf32>
    %33 = tpu.matmul %29, %32, %cst_11 {dimension_numbers = #tpu.dot_dimension_numbers<[1], [0], [0], [1], [0, 0, 1, 1], [], []>} : vector<8x32xbf16>, vector<32x8xbf16>, vector<8x8xf32> -> vector<8x8xf32>
    %c0_12 = arith.constant 0 : index
    %c0_13 = arith.constant 0 : index
    %c0_14 = arith.constant 0 : index
    %34 = vector.load %arg12[%c0_12, %c0_13, %c0_14] : memref<1x1x8xf32, #tpu.memory_space<vmem>>, vector<1x1x8xf32>
    %35 = vector.shape_cast %34 : vector<1x1x8xf32> to vector<1x8xf32>
    %cst_15 = arith.constant 1.000000e+00 : f32
    %36 = vector.broadcast %cst_15 : f32 to vector<1x8xf32>
    %37 = arith.subf %35, %36 : vector<1x8xf32>
    %cst_16 = arith.constant 1.76776692E+11 : f32
    %38 = vector.broadcast %cst_16 : f32 to vector<1x8xf32>
    %39 = arith.mulf %37, %38 : vector<1x8xf32>
    %40 = tpu.iota {dimensions = array<i32: 0>} : vector<8x8xi32>
    %41 = vector.broadcast %6 : i32 to vector<8x8xi32>
    %42 = arith.addi %41, %40 : vector<8x8xi32>
    %43 = tpu.iota {dimensions = array<i32: 1>} : vector<8x8xi32>
    %44 = arith.cmpi sgt, %42, %43 : vector<8x8xi32>
    %cst_17 = arith.constant -1.76776692E+11 : f32
    %cst_18 = arith.constant 0.000000e+00 : f32
    %45 = vector.broadcast %cst_17 : f32 to vector<8x8xf32>
    %46 = vector.broadcast %cst_18 : f32 to vector<8x8xf32>
    %47 = arith.select %44, %45, %46 : vector<8x8xi1>, vector<8x8xf32>
    %48 = vector.broadcast %35 : vector<1x8xf32> to vector<8x8xf32>
    %49 = arith.mulf %33, %48 : vector<8x8xf32>
    %50 = vector.broadcast %39 : vector<1x8xf32> to vector<8x8xf32>
    %51 = arith.addf %49, %50 : vector<8x8xf32>
    %52 = arith.addf %51, %47 : vector<8x8xf32>
    %c0_19 = arith.constant 0 : index
    %c0_20 = arith.constant 0 : index
    %c0_21 = arith.constant 0 : index
    %c0_22 = arith.constant 0 : index
    %53 = vector.load %arg13[%c0_19, %c0_20, %c0_21, %c0_22] : memref<1x1x8x8xf32, #tpu.memory_space<vmem>>, vector<1x1x8x8xf32>
    %54 = vector.shape_cast %53 : vector<1x1x8x8xf32> to vector<8x8xf32>
    %55 = vector.shape_cast %52 : vector<8x8xf32> to vector<1x1x8x8xf32>
    tpu.vector_store %arg13[%c0_19, %c0_20, %c0_21, %c0_22], %55 {strides = array<i32>} : memref<1x1x8x8xf32, #tpu.memory_space<vmem>>, vector<1x1x8x8xf32>,
    return
  }
  func.func @transform_0(%arg0: i32, %arg1: i32, %arg2: i32) -> (i32, i32, i32) {
    %c0_i32 = arith.constant 0 : i32
    %c0_i32_0 = arith.constant 0 : i32
    %c0_i32_1 = arith.constant 0 : i32
    return %arg0, %c0_i32, %c0_i32_0 : i32, i32, i32
  }
  func.func @transform_1(%arg0: i32, %arg1: i32, %arg2: i32) -> (i32, i32, i32) {
    %c0_i32 = arith.constant 0 : i32
    %c0_i32_0 = arith.constant 0 : i32
    %c0_i32_1 = arith.constant 0 : i32
    %c0_i32_2 = arith.constant 0 : i32
    return %c0_i32, %c0_i32_0, %c0_i32_1 : i32, i32, i32
  }
  func.func @transform_2(%arg0: i32, %arg1: i32, %arg2: i32) -> (i32, i32) {
    %c0_i32 = arith.constant 0 : i32
    %c0_i32_0 = arith.constant 0 : i32
    %c0_i32_1 = arith.constant 0 : i32
    return %c0_i32, %c0_i32_0 : i32, i32
  }
  func.func @transform_3(%arg0: i32, %arg1: i32, %arg2: i32) -> (i32, i32, i32) {
    %c0_i32 = arith.constant 0 : i32
    %c0_i32_0 = arith.constant 0 : i32
    %c0_i32_1 = arith.constant 0 : i32
    %c0_i32_2 = arith.constant 0 : i32
    return %c0_i32, %c0_i32_0, %c0_i32_1 : i32, i32, i32
  }
  func.func @transform_4(%arg0: i32, %arg1: i32, %arg2: i32) -> (i32, i32) {
    %c0_i32 = arith.constant 0 : i32
    %c0_i32_0 = arith.constant 0 : i32
    %c0_i32_1 = arith.constant 0 : i32
    return %c0_i32, %c0_i32_0 : i32, i32
  }
  func.func @transform_5(%arg0: i32, %arg1: i32, %arg2: i32) -> (i32, i32) {
    %c0_i32 = arith.constant 0 : i32
    %c0_i32_0 = arith.constant 0 : i32
    %c0_i32_1 = arith.constant 0 : i32
    return %c0_i32, %c0_i32_0 : i32, i32
  }
  func.func @transform_6(%arg0: i32, %arg1: i32, %arg2: i32) -> (i32, i32) {
    %c0_i32 = arith.constant 0 : i32
    %c0_i32_0 = arith.constant 0 : i32
    %c0_i32_1 = arith.constant 0 : i32
    return %c0_i32, %c0_i32_0 : i32, i32
  }
  func.func @transform_7(%arg0: i32, %arg1: i32, %arg2: i32) -> (i32, i32) {
    %c0_i32 = arith.constant 0 : i32
    %c0_i32_0 = arith.constant 0 : i32
    %c0_i32_1 = arith.constant 0 : i32
    return %c0_i32, %c0_i32_0 : i32, i32
  }
  func.func @transform_8(%arg0: i32, %arg1: i32, %arg2: i32) -> (i32, i32) {
    %c0_i32 = arith.constant 0 : i32
    %c0_i32_0 = arith.constant 0 : i32
    %c0_i32_1 = arith.constant 0 : i32
    return %c0_i32, %c0_i32_0 : i32, i32
  }
  func.func @transform_9(%arg0: i32, %arg1: i32, %arg2: i32) -> (i32, i32, i32) {
    %c0_i32 = arith.constant 0 : i32
    %c0_i32_0 = arith.constant 0 : i32
    %c0_i32_1 = arith.constant 0 : i32
    return %arg0, %c0_i32, %c0_i32_0 : i32, i32, i32
  }
  func.func @transform_10(%arg0: i32, %arg1: i32, %arg2: i32) -> (i32, i32, i32, i32) {
    %c0_i32 = arith.constant 0 : i32
    %c0_i32_0 = arith.constant 0 : i32
    return %arg0, %arg1, %arg2, %c0_i32 : i32, i32, i32, i32
  }
}

</mosaic_0001>

<bundles_post_ra>
// kernel: tpu_custom_call.1
= control target key start
LH: loop header
LB: loop body
LE: loop exit
PB: predicated region body
PF: predicated region fallthrough
CT: control target
= control target key end

     0   :  { %15 = vsyncpa [#allocation4], 0  ;;  %s1728_s0 = inlined_call_operand.vmem [shape: bf16[2,8,32], index: 0, kind: input, shape index: {}]   ;;  %s1729_s1 = inlined_call_operand.vmem [shape: bf16[4,32,32], index: 1, kind: input, shape index: {}]   ;;  %s1730_s2 = inlined_call_operand.vmem [shape: bf16[128,32], index: 2, kind: input, shape index: {}]   ;;  %s1731_s3 = inlined_call_operand.vmem [shape: f32[4,1,32], index: 3, kind: input, shape index: {}]   ;;  %s1732_s4 = inlined_call_operand.vmem [shape: f32[128,1], index: 4, kind: input, shape index: {}]   ;;  %s1733_s5 = inlined_call_operand.vmem [shape: bf16[8,32], index: 5, kind: input, shape index: {}]   ;;  %s1734_s6 = inlined_call_operand.vmem [shape: bf16[8,32], index: 6, kind: input, shape index: {}]   ;;  %s1735_s7 = inlined_call_operand.vmem [shape: bf16[32,8], index: 7, kind: input, shape index: {}]   ;;  %s1736_s8 = inlined_call_operand.vmem [shape: bf16[32,8], index: 8, kind: input, shape index: {}]   ;;  %s1737_s9 = inlined_call_operand.vmem [shape: f32[2,1,8], index: 9, kind: input, shape index: {}]   ;;  %s1738_s10 = inlined_call_operand.hbm [shape: f32[2,4,8,8], index: 10, kind: output, shape index: {}]  }
   0x1   :  { %17 = vsyncpa [#allocation4 + $0x1], 0  ;;  %s1424_s13 = smov 0   ;;  %s1426_s14 = smov 0  }
   0x2   :  { %s1428_s15 = smov 0   ;;  %s1430_s16 = smov 0  }
   0x3   :  { %s1432_s17 = smov 0   ;;  %s1434_s18 = smov 0  }
   0x4   :  { %s1436_s19 = smov 0   ;;  %s1438_s20 = smov 0  }
   0x5 LB: > { %1746 = sst [smem:[#allocation6_spill]] %s1342_s15  ;;  %s1022_s21 = sadd.s32 4294967295, %s1362_s20   ;;  %s1362_s20 = sphi %s1438_s20, %s23_s20   ;;  %s1358_s19 = sphi %s1436_s19, %s1764_s19   ;;  %s1354_s18 = sphi %s1434_s18, %s1763_s18   ;;  %s1350_s17 = sphi %s1432_s17, %s1767_s17   ;;  %s1346_s16 = sphi %s1430_s16, %s1761_s16   ;;  %s1342_s15 = sphi %s1428_s15, %s1760_s15   ;;  %s1338_s14 = sphi %s1426_s14, %s1766_s14   ;;  %s1334_s13 = sphi %s1424_s13, %s1765_s13  }
   0x6   : > { %1747 = sst [smem:[#allocation7_spill]] %s1354_s18  ;;  %s1023_s22 = sadd.s32 4294967294, %s1362_s20  }
   0x7   : > { %1748 = sst [smem:[#allocation8_spill]] %s1358_s19  ;;  %s38_s23 = sadd.s32 1, %s1354_s18 }
   0x8   : > { %p40_p0 = scmp.ge.s32.totalorder %s38_s23, 4  ;;  %s42_s24 = sadd.s32 1, %s1358_s19 }
   0x9   : > { %p283_p1 = scmp.ne.s32.totalorder %s1342_s15, %s1338_s14  ;;  %p284_p2 = scmp.eq.s32.totalorder %s1022_s21, 7 }
   0xa   : > { %s1769_s23 = smov (%p40_p0, %s38_s23), 0  ;;  %s1771_s24 = smov (!%p40_p0, %s42_s24), %s1358_s19 }
   0xb   : > { %1749 = sst [smem:[#allocation9_spill]] %s1769_s23  ;;  %s267_s25 = ssub.s32 %s1354_s18, %s1769_s23 }
   0xc   : > { %p1475_p3 = por %p284_p2, %p283_p1  ;;  %p44_p4 = scmp.ge.s32.totalorder %s1771_s24, 2 }
   0xd   : > { %p289_p5 = scmp.ne.s32.totalorder %s1338_s14, %s1334_s13  ;;  %p290_p6 = scmp.eq.s32.totalorder %s1023_s22, 7 }
   0xe   : > { %p1026_p7 = scmp.ge.s32.totalorder %s1362_s20, 1  ;;  %s1773_s24 = smov (%p44_p4, %s1771_s24), 0 }
   0xf   : > { %1751 = sst [smem:[#allocation10_spill]] %s1773_s24  ;;  %p1484_p8 = por %p290_p6, %p289_p5 }
  0x10   : > { %p345_p9 = scmp.lt.s32.totalorder %s1362_s20, 9  ;;  %s266_s28 = ssub.s32 %s1358_s19, %s1773_s24 }
  0x11   : > { %s1752_s27 = scalar_select %p1484_p8, 1, 0 }
  0x12   : > { %s273_s29 = sadd.s32 1, %s1342_s15  ;;  %s268_s30 = sor.u32 %s267_s25, %s266_s28 }
  0x13   : > { %1753 = sst [smem:[#allocation11_spill]] %s1752_s27  ;;  %p346_p10 = pnand %p1026_p7, %p345_p9 }
  0x14   : > { %p271_p11 = scmp.eq.s32.totalorder %s268_s30, 0  ;;  %s1744_s12 = sand.u32 (!%p346_p10), 1, %s1338_s14  }
  0x15   : > { %349 = sbr.rel (%p346_p10) target bundleno = 835 (0x343), region = 60  ;;  %p385_p12 = scmp.lt.s32.totalorder (!%p346_p10), %s1350_s17, 1 }
  0x16   : > { %s1493_s11 = scalar_select %p271_p11, %s1342_s15, %s273_s29  }
  0x17   : > { %s1499_s21 = sshll.u32 (!%p346_p10), %s1744_s12, 3  ;;  %p393_p13 = scmp.eq.s32.totalorder (!%p346_p10), %s1346_s16, 0 }
  0x18   : > { %1754 = sst [smem:[#allocation12_spill]] %s1493_s11 }
  0x1a   : > { %s386_s22 = scalar_select %p385_p12, %s1350_s17, 1  ;;  %v418_v0 = vld [vmem:[%s1732_s4 + $0x10] sm:$0xff] (%p393_p13)  ;;  %v416_v1 = vld [vmem:[%s1732_s4] sm:$0xff] (%p393_p13)  ;;  %vm552_vm0 = vcmask (%p393_p13), 261120   ;;  %v1364_v3 = vmov (%p393_p13), 0   ;;  %v419_v10 = vld [vmem:[%s1732_s4 + $0x18] sm:$0xff] (%p393_p13) }
  0x1b   : > { %398 = sbr.rel (!%p393_p13) target bundleno = 208 (0xd0), region = 64  ;;  %1264 = vset.pattern.permute.xlu1 (%p393_p13), %v1364_v3  ;;  %1263 = vset.pattern.permute.xlu0 (%p393_p13), %v1364_v3  ;;  %v420_v5 = vld [vmem:[%s1732_s4 + $0x20] sm:$0xff] (%p393_p13)  ;;  %v1100_v7 = vld [vmem:[%s1730_s2 + $0x10] sm:$0xff] (%p393_p13)  ;;  %v417_v11 = vld [vmem:[%s1732_s4 + $0x8] sm:$0xff] (%p393_p13)  ;;  %vm661_vm1 = vcmask (%p393_p13), 60416  }
  0x1c   : > { %s1028_s24 = sshll.u32 %s386_s22, 2  ;;  %s1506_s29 = scalar_lea.vmem %s1737_s9, %s386_s22  ;;  %444 = vperm.xlu1 (%p393_p13), %1264, %v418_v0   ;;  %434 = vperm.xlu0 (%p393_p13), %1263, %v416_v1   ;;  %v1098_v6 = vld [vmem:[%s1730_s2] sm:$0xff] (%p393_p13)  ;;  %v1104_v9 = vld [vmem:[%s1730_s2 + $0x30] sm:$0xff] (%p393_p13)  ;;  %v421_v12 = vld [vmem:[%s1732_s4 + $0x28] sm:$0xff] (%p393_p13) }
  0x1d   : > { %s1511_s19 = scalar_lea.vmem %s1728_s0, %s1028_s24  ;;  %1265 = vset.pattern.permute.xlu2 (%p393_p13), %v1364_v3  ;;  %v1102_v8 = vld [vmem:[%s1730_s2 + $0x20] sm:$0xff] (%p393_p13)  ;;  %v423_v13 = vld [vmem:[%s1732_s4 + $0x38] sm:$0xff] (%p393_p13)  ;;  %v422_v14 = vld [vmem:[%s1732_s4 + $0x30] sm:$0xff] (%p393_p13) }
  0x1e   : > { %v399_v2 = vld [vmem:[%s1511_s19] sm:$0xf] (%p393_p13)  ;;  %454 = vperm.xlu2 (%p393_p13), %1265, %v420_v5   ;;  %v1099_v16 = vld [vmem:[%s1730_s2 + $0x8] sm:$0xff] (%p393_p13)  ;;  %v1101_v17 = vld [vmem:[%s1730_s2 + $0x18] sm:$0xff] (%p393_p13) }
  0x1f   : > { %v578_v4 = vsel (%p393_p13), %vm552_vm0, %v399_v2, 0  ;;  %v424_v15 = vld [vmem:[%s1732_s4 + $0x40] sm:$0xff] (%p393_p13)  ;;  %v1103_v18 = vld [vmem:[%s1730_s2 + $0x28] sm:$0xff] (%p393_p13)  ;;  %v1105_v19 = vld [vmem:[%s1730_s2 + $0x38] sm:$0xff] (%p393_p13) }
  0x20   : > { %587 = vmatpush.bf16.xpose.msra.mxu0 %v578_v4  ;;  %1184 = vmatpush.bf16.xpose.msra.mxu1 %v578_v4  ;;  %v426_v20 = vld [vmem:[%s1732_s4 + $0x50] sm:$0xff]  ;;  %v425_v21 = vld [vmem:[%s1732_s4 + $0x48] sm:$0xff]  ;;  %v427_v22 = vld [vmem:[%s1732_s4 + $0x58] sm:$0xff] }
  0x21   : > { %1185 = vmatpush.bf16.xpose.msra.mxu2 %v578_v4  ;;  %1186 = vmatpush.bf16.xpose.msra.mxu3 %v578_v4  ;;  %v429_v23 = vld [vmem:[%s1732_s4 + $0x68] sm:$0xff]  ;;  %v428_v24 = vld [vmem:[%s1732_s4 + $0x60] sm:$0xff]  ;;  %v430_v25 = vld [vmem:[%s1732_s4 + $0x70] sm:$0xff] }
  0x22   : > { %v431_v26 = vld [vmem:[%s1732_s4 + $0x78] sm:$0xff]  ;;  %v1113_v43 = vld [vmem:[%s1736_s8] sm:$0xff]   ;;  %v1177_v44 = vld [vmem:[%s1735_s7 + $0x8] sm:$0xff]  }
  0x23   : > { %v1176_v46 = vld [vmem:[%s1736_s8 + $0x8] sm:$0xff]   ;;  %v1121_v47 = vld [vmem:[%s1735_s7] sm:$0xff]   ;;  %v1114_v49 = vunpack.c.l.bf16 %v1113_v43  ;;  %v1126_v50 = vunpack.c.l.bf16 %v1177_v44  ;;  %v1616_v58 = vunpack.c.h.bf16 %v1113_v43  ;;  %v1618_v59 = vunpack.c.h.bf16 %v1177_v44 }
  0x24   : > { %449 = vperm.xlu1 %1264, %v419_v10   ;;  %439 = vperm.xlu0 %1263, %v417_v11   ;;  %v1118_v55 = vunpack.c.l.bf16 %v1176_v46  ;;  %v1122_v56 = vunpack.c.l.bf16 %v1121_v47 }
  0x26   : > { %459 = vperm.xlu2 %1265, %v421_v12  }
  0x27   : > { %1062 = vmatmul.msk.bf16.vlgmr.msra.gmra.mxu0 %vm552_vm0, %v1098_v6  ;;  %1064 = vmatmul.msk.bf16.vlgmr.msra.gmra.mxu1 %vm552_vm0, %v1100_v7 }
  0x28   : > { %1066 = vmatmul.msk.bf16.vlgmr.msra.gmra.mxu2 %vm552_vm0, %v1102_v8  ;;  %1068 = vmatmul.msk.bf16.vlgmr.msra.gmra.mxu3 %vm552_vm0, %v1104_v9 }
  0x2c   : > { %469 = vperm.xlu1 %1264, %v423_v13   ;;  %464 = vperm.xlu0 %1263, %v422_v14   ;;  %v1620_v13 = vunpack.c.h.bf16 %v1176_v46  ;;  %v1622_v14 = vunpack.c.h.bf16 %v1121_v47 }
  0x2e   : > { %474 = vperm.xlu2 %1265, %v424_v15  }
  0x34   : > { %484 = vperm.xlu1 %1264, %v426_v20   ;;  %479 = vperm.xlu0 %1263, %v425_v21  }
  0x36   : > { %489 = vperm.xlu2 %1265, %v427_v22  }
  0x37   : > { %1063 = vmatmul.msk.bf16.gmra.mxu0 %vm552_vm0, %v1099_v16  ;;  %1065 = vmatmul.msk.bf16.gmra.mxu1 %vm552_vm0, %v1101_v17 }
  0x38   : > { %1067 = vmatmul.msk.bf16.gmra.mxu2 %vm552_vm0, %v1103_v18  ;;  %1069 = vmatmul.msk.bf16.gmra.mxu3 %vm552_vm0, %v1105_v19 }
  0x3c   : > { %499 = vperm.xlu1 %1264, %v429_v23   ;;  %494 = vperm.xlu0 %1263, %v428_v24  }
  0x3e   : > { %504 = vperm.xlu2 %1265, %v430_v25  }
  0x44   : > { %509 = vperm.xlu0 %1263, %v431_v26  }
  0x78   : > { %v455_v28 = vpop.permute.xlu2 %454 }
  0x80   : > { %v460_v31 = vpop.permute.xlu2 %459 }
  0x88   : > { %v475_v36 = vpop.permute.xlu2 %474 }
  0x8e   : > { %v435_v27 = vpop.permute.xlu0 %434  ;;  %v445_v29 = vpop.permute.xlu1 %444 }
  0x90   : > { %v1606_v45 = vpop.permute.xlu2 %489 }
  0x96   : > { %v440_v30 = vpop.permute.xlu0 %439  ;;  %v1596_v32 = vpop.permute.xlu1 %449 }
  0x98   : > { %v505_v19 = vpop.permute.xlu2 %504 }
  0x9e   : > { %v465_v33 = vpop.permute.xlu0 %464  ;;  %v1598_v37 = vpop.permute.xlu1 %469 }
  0xa4   : > { %v589_v34 = vpop.f32.mrf.mxu0  ;;  %v599_v35 = vpop.f32.mrf.mxu1 }
  0xa5   : > { %v590_v48 = vadd.f32 %v589_v34, %v435_v27  ;;  %v600_v51 = vadd.f32 %v599_v35, %v455_v28 }
  0xa6   : > { %v480_v38 = vpop.permute.xlu0 %479  ;;  %v485_v52 = vpop.permute.xlu1 %484 }
  0xa7   : > { %v637_v62 = vmul.f32 %v1114_v49, %v590_v48  ;;  %v651_v63 = vmul.f32 %v1126_v50, %v590_v48  ;;  %v674_v3 = vmul.f32 %v1114_v49, %v600_v51  ;;  %v688_v4 = vmul.f32 %v1126_v50, %v600_v51 }
  0xab   : > { %v609_v39 = vpop.f32.mrf.mxu2  ;;  %v619_v40 = vpop.f32.mrf.mxu3 }
  0xac   : > { %v591_v41 = vpop.f32.mrf.mxu0  ;;  %v601_v42 = vpop.f32.mrf.mxu1  ;;  %v610_v57 = vadd.f32 %v609_v39, %v475_v36 }
  0xad   : > { %v592_v5 = vadd.f32 %v591_v41, %v440_v30  ;;  %v602_v6 = vadd.f32 %v601_v42, %v460_v31 }
  0xae   : > { %v495_v0 = vpop.permute.xlu0 %494  ;;  %v711_v11 = vmul.f32 %v1114_v49, %v610_v57  ;;  %v725_v20 = vmul.f32 %v1126_v50, %v610_v57  ;;  %v500_v43 = vpop.permute.xlu1 %499 }
  0xaf   : > { %v620_v12 = vadd.f32 %v619_v40, %v495_v0  ;;  %v638_v21 = vmul.f32 %v1616_v58, %v592_v5  ;;  %v652_v22 = vmul.f32 %v1618_v59, %v592_v5  ;;  %v675_v23 = vmul.f32 %v1616_v58, %v602_v6 }
  0xb0   : > { %v689_v24 = vmul.f32 %v1618_v59, %v602_v6 }
  0xb1   : > { %v748_v39 = vmul.f32 %v1114_v49, %v620_v12  ;;  %v762_v40 = vmul.f32 %v1126_v50, %v620_v12 }
  0xb3   : > { %v611_v53 = vpop.f32.mrf.mxu2  ;;  %v1614_v54 = vpop.f32.mrf.mxu3 }
  0xb4   : > { %v594_v60 = vpop.f32.mrf.mxu0  ;;  %v604_v61 = vpop.f32.mrf.mxu1  ;;  %v612_v30 = vadd.f32 %v611_v53, %v480_v38  ;;  %v622_v57 = vadd.f32 %v1614_v54, %v500_v43 }
  0xb5   : > { %v595_v1 = vadd.f32 %v594_v60, %v445_v29  ;;  %v605_v2 = vadd.f32 %v604_v61, %v465_v33 }
  0xb6   : > { %v510_v61 = vpop.permute.xlu0 %509  ;;  %v726_v6 = vmul.f32 %v1618_v59, %v612_v30 }
  0xb7   : > { %v639_v7 = vmul.f32 %v1118_v55, %v595_v1  ;;  %v649_v8 = vmul.f32 %v1122_v56, %v595_v1  ;;  %v676_v9 = vmul.f32 %v1118_v55, %v605_v2  ;;  %v686_v10 = vmul.f32 %v1122_v56, %v605_v2 }
  0xb8   : > { %v712_v1 = vmul.f32 %v1616_v58, %v612_v30 }
  0xb9   : > { %v653_v15 = vadd.f32 %v649_v8, %v637_v62  ;;  %v655_v16 = vadd.f32 %v651_v63, %v639_v7  ;;  %v690_v17 = vadd.f32 %v686_v10, %v674_v3  ;;  %v692_v18 = vadd.f32 %v688_v4, %v676_v9 }
  0xba   : > { %v749_v9 = vmul.f32 %v1616_v58, %v622_v57  ;;  %v763_v10 = vmul.f32 %v1618_v59, %v622_v57 }
  0xbb   : > { %v657_v25 = vpack.c.bf16 %v653_v15, %v653_v15  ;;  %v659_v26 = vpack.c.bf16 %v655_v16, %v655_v16  ;;  %v694_v27 = vpack.c.bf16 %v690_v17, %v690_v17  ;;  %v614_v28 = vpop.f32.mrf.mxu2  ;;  %v624_v29 = vpop.f32.mrf.mxu3  ;;  %v696_v31 = vpack.c.bf16 %v692_v18, %v692_v18 }
  0xbc   : > { %v615_v33 = vadd.f32 %v614_v28, %v485_v52  ;;  %v625_v34 = vadd.f32 %v624_v29, %v505_v19  ;;  %v596_v35 = vpop.f32.mrf.mxu0  ;;  %v606_v36 = vpop.f32.mrf.mxu1 }
  0xbd   : > { %662 = vst.msk [vmem:[#allocation2] sm:$0xf] %vm661_vm1, %v657_v25  ;;  %v597_v41 = vadd.f32 %v596_v35, %v1596_v32  ;;  %v607_v42 = vadd.f32 %v606_v36, %v1598_v37 }
  0xbe   : > { %664 = vst.msk [vmem:[#allocation2 + $0x8] sm:$0xf] %vm661_vm1, %v659_v26  ;;  %v713_v44 = vmul.f32 %v1118_v55, %v615_v33  ;;  %v723_v46 = vmul.f32 %v1122_v56, %v615_v33  ;;  %v750_v47 = vmul.f32 %v1118_v55, %v625_v34  ;;  %v760_v38 = vmul.f32 %v1122_v56, %v625_v34 }
  0xbf   : > { %699 = vst.msk [vmem:[#allocation2 + $0x10] sm:$0xf] %vm661_vm1, %v694_v27  ;;  %v640_v48 = vmul.f32 %v1620_v13, %v597_v41  ;;  %v650_v49 = vmul.f32 %v1622_v14, %v597_v41  ;;  %v677_v50 = vmul.f32 %v1620_v13, %v607_v42  ;;  %v687_v51 = vmul.f32 %v1622_v14, %v607_v42 }
  0xc0   : > { %701 = vst.msk [vmem:[#allocation2 + $0x18] sm:$0xf] %vm661_vm1, %v696_v31  ;;  %v727_v32 = vadd.f32 %v723_v46, %v711_v11  ;;  %v729_v37 = vadd.f32 %v725_v20, %v713_v44  ;;  %v764_v52 = vadd.f32 %v760_v38, %v748_v39  ;;  %v766_v53 = vadd.f32 %v762_v40, %v750_v47 }
  0xc1   : > { %v654_v55 = vadd.f32 %v650_v49, %v638_v21  ;;  %v656_v56 = vadd.f32 %v652_v22, %v640_v48  ;;  %v691_v60 = vadd.f32 %v687_v51, %v675_v23  ;;  %v693_v3 = vadd.f32 %v689_v24, %v677_v50 }
  0xc2   : > { %v731_v62 = vpack.c.bf16 %v727_v32, %v727_v32  ;;  %v733_v63 = vpack.c.bf16 %v729_v37, %v729_v37  ;;  %v768_v0 = vpack.c.bf16 %v764_v52, %v764_v52  ;;  %v770_v2 = vpack.c.bf16 %v766_v53, %v766_v53 }
  0xc3   : > { %v616_v4 = vpop.f32.mrf.mxu2  ;;  %v626_v5 = vpop.f32.mrf.mxu3  ;;  %v658_v7 = vpack.c.bf16 %v654_v55, %v654_v55  ;;  %v660_v11 = vpack.c.bf16 %v656_v56, %v656_v56  ;;  %v695_v12 = vpack.c.bf16 %v691_v60, %v691_v60 }
  0xc4   : > { %736 = vst.msk [vmem:[#allocation2 + $0x20] sm:$0xf] %vm661_vm1, %v731_v62  ;;  %v617_v54 = vadd.f32 %v616_v4, %v1606_v45  ;;  %v627_v8 = vadd.f32 %v626_v5, %v510_v61  ;;  %v697_v45 = vpack.c.bf16 %v693_v3, %v693_v3 }
  0xc5   : > { %738 = vst.msk [vmem:[#allocation2 + $0x28] sm:$0xf] %vm661_vm1, %v733_v63 }
  0xc6   : > { %773 = vst.msk [vmem:[#allocation2 + $0x30] sm:$0xf] %vm661_vm1, %v768_v0  ;;  %v714_v15 = vmul.f32 %v1620_v13, %v617_v54  ;;  %v724_v16 = vmul.f32 %v1622_v14, %v617_v54  ;;  %v751_v17 = vmul.f32 %v1620_v13, %v627_v8  ;;  %v761_v18 = vmul.f32 %v1622_v14, %v627_v8 }
  0xc7   : > { %775 = vst.msk [vmem:[#allocation2 + $0x38] sm:$0xf] %vm661_vm1, %v770_v2 }
  0xc8   : > { %663 = vst.msk [vmem:[#allocation2 + $0x4] sm:$0xf] %vm661_vm1, %v658_v7  ;;  %v728_v58 = vadd.f32 %v724_v16, %v712_v1  ;;  %v730_v59 = vadd.f32 %v726_v6, %v714_v15  ;;  %v765_v19 = vadd.f32 %v761_v18, %v749_v9  ;;  %v767_v20 = vadd.f32 %v763_v10, %v751_v17 }
  0xc9   : > { %665 = vst.msk [vmem:[#allocation2 + $0xc] sm:$0xf] %vm661_vm1, %v660_v11 }
  0xca   : > { %700 = vst.msk [vmem:[#allocation2 + $0x14] sm:$0xf] %vm661_vm1, %v695_v12  ;;  %v732_v21 = vpack.c.bf16 %v728_v58, %v728_v58  ;;  %v734_v22 = vpack.c.bf16 %v730_v59, %v730_v59  ;;  %v769_v23 = vpack.c.bf16 %v765_v19, %v765_v19  ;;  %v771_v13 = vpack.c.bf16 %v767_v20, %v767_v20 }
  0xcb   : > { %702 = vst.msk [vmem:[#allocation2 + $0x1c] sm:$0xf] %vm661_vm1, %v697_v45 }
  0xcc   : > { %737 = vst.msk [vmem:[#allocation2 + $0x24] sm:$0xf] %vm661_vm1, %v732_v21 }
  0xcd   : > { %739 = vst.msk [vmem:[#allocation2 + $0x2c] sm:$0xf] %vm661_vm1, %v734_v22 }
  0xce   : > { %774 = vst.msk [vmem:[#allocation2 + $0x34] sm:$0xf] %vm661_vm1, %v769_v23 }
  0xcf   : > { %776 = vst.msk [vmem:[#allocation2 + $0x3c] sm:$0xf] %vm661_vm1, %v771_v13 }
  0xd0 PF: > { %s1106_s25 = sshll.u32 %s1346_s16, 4  ;;  %s790_s23 = scalar_lea.vmem %s1731_s3, %s1346_s16  ;;  %v782_v25 = vld [vmem:[%s1511_s19] sm:$0xf]  ;;  %vm807_vm2 = vcmask 261120   ;;  %vm829_vm3 = vcmask 1047808   ;;  %v888_v51 = vlaneseq  ;;  %v1368_v60 = vmov 0.0  }
  0xd1   : > { %s785_s27 = scalar_lea.vmem %s1729_s1, %s1106_s25  ;;  %v1266_v26 = vld [vmem:[%s790_s23] ss:$0 sm:$0xff]  ;;  %s1365_s11 = smov 32   ;;  %vm905_vm5 = vcmask 64512  }
  0xd2   : > { %v1108_v14 = vld [vmem:[%s785_s27 + $0x8] sm:$0xff]  ;;  %v1107_v24 = vld [vmem:[%s785_s27] sm:$0xff]  ;;  %s1366_s18 = smov 16   ;;  %s852_s19 = scalar_lea.vmem [#allocation2], %s1106_s25  ;;  %v889_v37 = vshrl.u32 %v888_v51, 7  ;;  %v893_v52 = vand.u32 127, %v888_v51 }
  0xd3   : > { %817 = vmatpush.bf16.msra.mxu0 %v1108_v14  ;;  %v838_v30 = vld [vmem:[%s1733_s5] sm:$0xf]  ;;  %s1367_s28 = smov 112   ;;  %s1093_s25 = sshll.u32 %s1350_s17, 2 }
  0xd4   : > { %v839_v31 = vunpack.c.l.bf16 %v838_v30  ;;  %v826_v43 = vld [vmem:[%s1734_s6] sm:$0xf]  ;;  %s919_s24 = sadd.s32 %s1346_s16, %s1093_s25  ;;  %vm894_vm4 = vcmp.gt.s32.totalorder %v889_v37, %v893_v52  ;;  %s1755_s17 = scalar_lea.vmem [#allocation3], %s1499_s21 }
  0xd5   : > { %v827_v44 = vunpack.c.l.bf16 %v826_v43  ;;  %v885_v49 = vld [vmem:[%s1506_s29] sm:$0x1]  ;;  %s1094_s15 = sshll.u32 %s919_s24, 3  ;;  %v895_v61 = vsel %vm894_vm4, -1.7677669e+11, %v1368_v60  ;;  %s923_s16 = sshll.u32 %s1755_s17, 4  ;;  %s924_s16 = int_to_ptr.vmem [resolvable:$true] %s923_s16 }
  0xd6   : > { %841 = vrot.lane.b32.xlu1 %v839_v31, %s1366_s18  ;;  %v1111_v35 = vld [vmem:[%s852_s19 + $0x8] sm:$0xff]  ;;  %v1110_v42 = vld [vmem:[%s852_s19] sm:$0xff]  ;;  %v1091_v50 = vadd.f32 -1.0, %v885_v49  ;;  %s921_s12 = scalar_lea.hbm %s1738_s10, %s1094_s15  ;;  %s1757_s18 = sand.u32 1, %s1338_s14  }
  0xd7   : > { %818 = vmatpush.bf16.msra.mxu0 %v1107_v24  ;;  %878 = vmatpush.bf16.msra.mxu1 %v1111_v35  ;;  %v1267_v53 = vld [vmem:[%s1506_s29] ss:$0 sm:$0xff]  ;;  %s925_s22 = sshll.u32 %s921_s12, 4  ;;  %s1756_s29 = smov %s1755_s17  ;;  %s926_s22 = int_to_ptr.hbm [resolvable:$true] %s925_s22 }
  0xd8   : > { %v887_v32 = vmul.f32 1.7677669e+11, %v1091_v50  ;;  %s908_s19 = scalar_lea.sflag [#allocation4], %s1757_s18  ;;  %s1288_s24 = scalar_lea.hbm %s1738_s10, 64 }
  0xda   : > { %1080 = vmatmul.msk.bf16.vlgmr.msra.gmra.mxu0 %vm807_vm2, %v782_v25  ;;  %v901_v57 = vperm.slane %v887_v32, 0 }
  0xdb   : > { %879 = vmatpush.bf16.msra.mxu1 %v1110_v42 }
 0x148   : > { %v842_v36 = vpop.permute.xlu1 %841 }
 0x157   : > { %v820_v27 = vpop.f32.mrf.mxu0 }
 0x158   : > { %v821_v28 = vadd.f32 %v1266_v26, %v820_v27 }
 0x15a   : > { %830 = vrot.lane.b32.xlu0 %v821_v28, %s1365_s11  ;;  %v828_v46 = vmul.f32 %v827_v44, %v821_v28 }
 0x15f   : > { %v822_v29 = vpop.f32.mrf.mxu0 }
 0x1cc   : > { %v831_v33 = vpop.permute.xlu0 %830 }
 0x1cd   : > { %v832_v34 = vsel %vm829_vm3, %v831_v33, %v821_v28 }
 0x1ce   : > { %833 = vrot.lane.b32.xlu0 %v832_v34, %s1365_s11 }
 0x240   : > { %v834_v39 = vpop.permute.xlu0 %833 }
 0x241   : > { %v835_v40 = vsel %vm829_vm3, %v834_v39, %v821_v28 }
 0x242   : > { %v844_v41 = vmul.f32 %v842_v36, %v835_v40 }
 0x244   : > { %846 = vrot.lane.b32.xlu1 %v844_v41, %s1367_s28  ;;  %s1282_s28 = sshra.s32 %s926_s22, 4  ;;  %s1283_s28 = int_to_ptr.hbm [resolvable:$true] %s1282_s28 }
 0x245   : > { %s1284_s30 = scalar_lea.hbm %s1283_s28, 8  ;;  %p1289_p4 = scmp.lt.s32.totalorder %s1283_s28, %s1738_s10 }
 0x246   : > { %p1285_p0 = scmp.ne.s32.totalorder %s1283_s28, %s1284_s30  ;;  %p1290_p5 = scmp.lt.s32.totalorder %s1288_s24, %s1284_s30 }
 0x248   : > { %p1286_p1 = pnand %p1285_p0, %p1475_p3  ;;  %p1291_p6 = por %p1290_p5, %p1289_p4 }
 0x24a   : > { %p1287_p2 = pneg %p1286_p1 }
 0x24c   : > { %p1292_p7 = pnand %p1291_p6, %p1287_p2 }
 0x2b6   : > { %v847_v47 = vpop.permute.xlu1 %846 }
 0x2b7   : > { %v849_v38 = vadd.f32 %v847_v47, %v828_v46 }
 0x2b9   : > { %v850_v48 = vpack.c.bf16 %v849_v38, %v849_v38 }
 0x2bb   : > { %1090 = vmatmul.msk.bf16.vlgmr.msra.gmra.mxu1 %vm807_vm2, %v850_v48 }
 0x338   : > { %v881_v55 = vpop.f32.mrf.mxu1 }
 0x339   : > { %v899_v56 = vmul.f32 %v1267_v53, %v881_v55 }
 0x33b   : > { %v903_v62 = vadd.f32 %v901_v57, %v899_v56 }
 0x33d   : > { %v904_v63 = vadd.f32 %v903_v62, %v895_v61 }
 0x33f   : > { %906 = vst.msk [vmem:[%s1756_s29] sm:$0xff] %vm905_vm5, %v904_v63 }
 0x340   : > { %v883_v0 = vpop.f32.mrf.mxu1 }
 0x341   : > { %1295 = shalt.err (!%p1292_p7)
}
 0x342   : > { %1187 = dma.vmem_to_hbm [thread:$0]  (%p1475_p3), %s924_s16, 128, %s926_s22, %s908_s19  }
 0x343 PF: > { %p1193_p9 = scmp.ge.s32.totalorder %s1362_s20, 2  ;;  %s937_s11 = sand.u32 1, %s1334_s13  }
 0x344   : > { %s938_s12 = scalar_lea.sflag [#allocation4], %s937_s11 }
 0x345   : > { %p1190_p10 = pnand %p1193_p9, %p1484_p8 }
 0x347   : > { %p1191_p11 = pneg %p1190_p10 }
 0x349   : > { %1329 = dma.done.wait (%p1191_p11), %s938_s12, 128  }
 0x34a   : > { %1331 = vsyncadd (%p1191_p11), %s938_s12, 4294967168  ;;  %s23_s20 = sadd.s32 1, %s1362_s20   ;;  %s1759_s17 = sld [smem:[#allocation6_spill]] }
 0x34b   : > { %p20_p12 = scmp.ge.s32.totalorder %s23_s20, 10   ;;  %s1760_s15 = sld [smem:[#allocation12_spill]] }
 0x34c   : > { %s1761_s16 = sld [smem:[#allocation7_spill]]  ;;  %s1765_s13 = smov %s1338_s14 }
 0x34d   : > { %s1762_s26 = sld [smem:[#allocation8_spill]] }
 0x34e   : > { %s1763_s18 = sld [smem:[#allocation9_spill]] }
 0x34f   : > { %s1764_s19 = sld [smem:[#allocation10_spill]]  ;;  %22 = sbr.rel (!%p20_p12) target bundleno = 5 (0x5), region = 111 }
 0x350   : > { %s1766_s14 = smov %s1759_s17 }
 0x353   : > { %s1767_s17 = smov %s1762_s26 }
 0x354   :  { %944 = vsyncpa [#allocation4], 1 }
 0x355   :  { %946 = vsyncpa [#allocation4 + $0x1], 1 }

// kernel: tpu_custom_call.1
= control target key start
LH: loop header
LB: loop body
LE: loop exit
PB: predicated region body
PF: predicated region fallthrough
CT: control target
= control target key end

     0   :  { %15 = vsyncpa [#allocation4], 0  ;;  %s1728_s0 = inlined_call_operand.vmem [shape: bf16[2,8,32], index: 0, kind: input, shape index: {}]   ;;  %s1729_s1 = inlined_call_operand.vmem [shape: bf16[4,32,32], index: 1, kind: input, shape index: {}]   ;;  %s1730_s2 = inlined_call_operand.vmem [shape: bf16[128,32], index: 2, kind: input, shape index: {}]   ;;  %s1731_s3 = inlined_call_operand.vmem [shape: f32[4,1,32], index: 3, kind: input, shape index: {}]   ;;  %s1732_s4 = inlined_call_operand.vmem [shape: f32[128,1], index: 4, kind: input, shape index: {}]   ;;  %s1733_s5 = inlined_call_operand.vmem [shape: bf16[8,32], index: 5, kind: input, shape index: {}]   ;;  %s1734_s6 = inlined_call_operand.vmem [shape: bf16[8,32], index: 6, kind: input, shape index: {}]   ;;  %s1735_s7 = inlined_call_operand.vmem [shape: bf16[32,8], index: 7, kind: input, shape index: {}]   ;;  %s1736_s8 = inlined_call_operand.vmem [shape: bf16[32,8], index: 8, kind: input, shape index: {}]   ;;  %s1737_s9 = inlined_call_operand.vmem [shape: f32[2,1,8], index: 9, kind: input, shape index: {}]   ;;  %s1738_s10 = inlined_call_operand.hbm [shape: f32[2,4,8,8], index: 10, kind: output, shape index: {}]  }
   0x1   :  { %17 = vsyncpa [#allocation4 + $0x1], 0  ;;  %s1424_s13 = smov 0   ;;  %s1426_s14 = smov 0  }
   0x2   :  { %s1428_s15 = smov 0   ;;  %s1430_s16 = smov 0  }
   0x3   :  { %s1432_s17 = smov 0   ;;  %s1434_s18 = smov 0  }
   0x4   :  { %s1436_s19 = smov 0   ;;  %s1438_s20 = smov 0  }
   0x5 LB: > { %1746 = sst [smem:[#allocation6_spill]] %s1342_s15  ;;  %s1022_s21 = sadd.s32 4294967295, %s1362_s20   ;;  %s1362_s20 = sphi %s1438_s20, %s23_s20   ;;  %s1358_s19 = sphi %s1436_s19, %s1764_s19   ;;  %s1354_s18 = sphi %s1434_s18, %s1763_s18   ;;  %s1350_s17 = sphi %s1432_s17, %s1767_s17   ;;  %s1346_s16 = sphi %s1430_s16, %s1761_s16   ;;  %s1342_s15 = sphi %s1428_s15, %s1760_s15   ;;  %s1338_s14 = sphi %s1426_s14, %s1766_s14   ;;  %s1334_s13 = sphi %s1424_s13, %s1765_s13  }
   0x6   : > { %1747 = sst [smem:[#allocation7_spill]] %s1354_s18  ;;  %s1023_s22 = sadd.s32 4294967294, %s1362_s20  }
   0x7   : > { %1748 = sst [smem:[#allocation8_spill]] %s1358_s19  ;;  %s38_s23 = sadd.s32 1, %s1354_s18 }
   0x8   : > { %p40_p0 = scmp.ge.s32.totalorder %s38_s23, 4  ;;  %s42_s24 = sadd.s32 1, %s1358_s19 }
   0x9   : > { %p283_p1 = scmp.ne.s32.totalorder %s1342_s15, %s1338_s14  ;;  %p284_p2 = scmp.eq.s32.totalorder %s1022_s21, 7 }
   0xa   : > { %s1769_s23 = smov (%p40_p0, %s38_s23), 0  ;;  %s1771_s24 = smov (!%p40_p0, %s42_s24), %s1358_s19 }
   0xb   : > { %1749 = sst [smem:[#allocation9_spill]] %s1769_s23  ;;  %s267_s25 = ssub.s32 %s1354_s18, %s1769_s23 }
   0xc   : > { %p1475_p3 = por %p284_p2, %p283_p1  ;;  %p44_p4 = scmp.ge.s32.totalorder %s1771_s24, 2 }
   0xd   : > { %p289_p5 = scmp.ne.s32.totalorder %s1338_s14, %s1334_s13  ;;  %p290_p6 = scmp.eq.s32.totalorder %s1023_s22, 7 }
   0xe   : > { %p1026_p7 = scmp.ge.s32.totalorder %s1362_s20, 1  ;;  %s1773_s24 = smov (%p44_p4, %s1771_s24), 0 }
   0xf   : > { %1751 = sst [smem:[#allocation10_spill]] %s1773_s24  ;;  %p1484_p8 = por %p290_p6, %p289_p5 }
  0x10   : > { %p345_p9 = scmp.lt.s32.totalorder %s1362_s20, 9  ;;  %s266_s28 = ssub.s32 %s1358_s19, %s1773_s24 }
  0x11   : > { %s1752_s27 = scalar_select %p1484_p8, 1, 0 }
  0x12   : > { %s273_s29 = sadd.s32 1, %s1342_s15  ;;  %s268_s30 = sor.u32 %s267_s25, %s266_s28 }
  0x13   : > { %1753 = sst [smem:[#allocation11_spill]] %s1752_s27  ;;  %p346_p10 = pnand %p1026_p7, %p345_p9 }
  0x14   : > { %p271_p11 = scmp.eq.s32.totalorder %s268_s30, 0  ;;  %s1744_s12 = sand.u32 (!%p346_p10), 1, %s1338_s14  }
  0x15   : > { %349 = sbr.rel (%p346_p10) target bundleno = 835 (0x343), region = 60  ;;  %p385_p12 = scmp.lt.s32.totalorder (!%p346_p10), %s1350_s17, 1 }
  0x16   : > { %s1493_s11 = scalar_select %p271_p11, %s1342_s15, %s273_s29  }
  0x17   : > { %s1499_s21 = sshll.u32 (!%p346_p10), %s1744_s12, 3  ;;  %p393_p13 = scmp.eq.s32.totalorder (!%p346_p10), %s1346_s16, 0 }
  0x18   : > { %1754 = sst [smem:[#allocation12_spill]] %s1493_s11 }
  0x1a   : > { %s386_s22 = scalar_select %p385_p12, %s1350_s17, 1  ;;  %v418_v0 = vld [vmem:[%s1732_s4 + $0x10] sm:$0xff] (%p393_p13)  ;;  %v416_v1 = vld [vmem:[%s1732_s4] sm:$0xff] (%p393_p13)  ;;  %vm552_vm0 = vcmask (%p393_p13), 261120   ;;  %v1364_v3 = vmov (%p393_p13), 0   ;;  %v419_v10 = vld [vmem:[%s1732_s4 + $0x18] sm:$0xff] (%p393_p13) }
  0x1b   : > { %398 = sbr.rel (!%p393_p13) target bundleno = 208 (0xd0), region = 64  ;;  %1264 = vset.pattern.permute.xlu1 (%p393_p13), %v1364_v3  ;;  %1263 = vset.pattern.permute.xlu0 (%p393_p13), %v1364_v3  ;;  %v420_v5 = vld [vmem:[%s1732_s4 + $0x20] sm:$0xff] (%p393_p13)  ;;  %v1100_v7 = vld [vmem:[%s1730_s2 + $0x10] sm:$0xff] (%p393_p13)  ;;  %v417_v11 = vld [vmem:[%s1732_s4 + $0x8] sm:$0xff] (%p393_p13)  ;;  %vm661_vm1 = vcmask (%p393_p13), 60416  }
  0x1c   : > { %s1028_s24 = sshll.u32 %s386_s22, 2  ;;  %s1506_s29 = scalar_lea.vmem %s1737_s9, %s386_s22  ;;  %444 = vperm.xlu1 (%p393_p13), %1264, %v418_v0   ;;  %434 = vperm.xlu0 (%p393_p13), %1263, %v416_v1   ;;  %v1098_v6 = vld [vmem:[%s1730_s2] sm:$0xff] (%p393_p13)  ;;  %v1104_v9 = vld [vmem:[%s1730_s2 + $0x30] sm:$0xff] (%p393_p13)  ;;  %v421_v12 = vld [vmem:[%s1732_s4 + $0x28] sm:$0xff] (%p393_p13) }
  0x1d   : > { %s1511_s19 = scalar_lea.vmem %s1728_s0, %s1028_s24  ;;  %1265 = vset.pattern.permute.xlu2 (%p393_p13), %v1364_v3  ;;  %v1102_v8 = vld [vmem:[%s1730_s2 + $0x20] sm:$0xff] (%p393_p13)  ;;  %v423_v13 = vld [vmem:[%s1732_s4 + $0x38] sm:$0xff] (%p393_p13)  ;;  %v422_v14 = vld [vmem:[%s1732_s4 + $0x30] sm:$0xff] (%p393_p13) }
  0x1e   : > { %v399_v2 = vld [vmem:[%s1511_s19] sm:$0xf] (%p393_p13)  ;;  %454 = vperm.xlu2 (%p393_p13), %1265, %v420_v5   ;;  %v1099_v16 = vld [vmem:[%s1730_s2 + $0x8] sm:$0xff] (%p393_p13)  ;;  %v1101_v17 = vld [vmem:[%s1730_s2 + $0x18] sm:$0xff] (%p393_p13) }
  0x1f   : > { %v578_v4 = vsel (%p393_p13), %vm552_vm0, %v399_v2, 0  ;;  %v424_v15 = vld [vmem:[%s1732_s4 + $0x40] sm:$0xff] (%p393_p13)  ;;  %v1103_v18 = vld [vmem:[%s1730_s2 + $0x28] sm:$0xff] (%p393_p13)  ;;  %v1105_v19 = vld [vmem:[%s1730_s2 + $0x38] sm:$0xff] (%p393_p13) }
  0x20   : > { %587 = vmatpush.bf16.xpose.msra.mxu0 %v578_v4  ;;  %1184 = vmatpush.bf16.xpose.msra.mxu1 %v578_v4  ;;  %v426_v20 = vld [vmem:[%s1732_s4 + $0x50] sm:$0xff]  ;;  %v425_v21 = vld [vmem:[%s1732_s4 + $0x48] sm:$0xff]  ;;  %v427_v22 = vld [vmem:[%s1732_s4 + $0x58] sm:$0xff] }
  0x21   : > { %1185 = vmatpush.bf16.xpose.msra.mxu2 %v578_v4  ;;  %1186 = vmatpush.bf16.xpose.msra.mxu3 %v578_v4  ;;  %v429_v23 = vld [vmem:[%s1732_s4 + $0x68] sm:$0xff]  ;;  %v428_v24 = vld [vmem:[%s1732_s4 + $0x60] sm:$0xff]  ;;  %v430_v25 = vld [vmem:[%s1732_s4 + $0x70] sm:$0xff] }
  0x22   : > { %v431_v26 = vld [vmem:[%s1732_s4 + $0x78] sm:$0xff]  ;;  %v1113_v43 = vld [vmem:[%s1736_s8] sm:$0xff]   ;;  %v1177_v44 = vld [vmem:[%s1735_s7 + $0x8] sm:$0xff]  }
  0x23   : > { %v1176_v46 = vld [vmem:[%s1736_s8 + $0x8] sm:$0xff]   ;;  %v1121_v47 = vld [vmem:[%s1735_s7] sm:$0xff]   ;;  %v1114_v49 = vunpack.c.l.bf16 %v1113_v43  ;;  %v1126_v50 = vunpack.c.l.bf16 %v1177_v44  ;;  %v1616_v58 = vunpack.c.h.bf16 %v1113_v43  ;;  %v1618_v59 = vunpack.c.h.bf16 %v1177_v44 }
  0x24   : > { %449 = vperm.xlu1 %1264, %v419_v10   ;;  %439 = vperm.xlu0 %1263, %v417_v11   ;;  %v1118_v55 = vunpack.c.l.bf16 %v1176_v46  ;;  %v1122_v56 = vunpack.c.l.bf16 %v1121_v47 }
  0x26   : > { %459 = vperm.xlu2 %1265, %v421_v12  }
  0x27   : > { %1062 = vmatmul.msk.bf16.vlgmr.msra.gmra.mxu0 %vm552_vm0, %v1098_v6  ;;  %1064 = vmatmul.msk.bf16.vlgmr.msra.gmra.mxu1 %vm552_vm0, %v1100_v7 }
  0x28   : > { %1066 = vmatmul.msk.bf16.vlgmr.msra.gmra.mxu2 %vm552_vm0, %v1102_v8  ;;  %1068 = vmatmul.msk.bf16.vlgmr.msra.gmra.mxu3 %vm552_vm0, %v1104_v9 }
  0x2c   : > { %469 = vperm.xlu1 %1264, %v423_v13   ;;  %464 = vperm.xlu0 %1263, %v422_v14   ;;  %v1620_v13 = vunpack.c.h.bf16 %v1176_v46  ;;  %v1622_v14 = vunpack.c.h.bf16 %v1121_v47 }
  0x2e   : > { %474 = vperm.xlu2 %1265, %v424_v15  }
  0x34   : > { %484 = vperm.xlu1 %1264, %v426_v20   ;;  %479 = vperm.xlu0 %1263, %v425_v21  }
  0x36   : > { %489 = vperm.xlu2 %1265, %v427_v22  }
  0x37   : > { %1063 = vmatmul.msk.bf16.gmra.mxu0 %vm552_vm0, %v1099_v16  ;;  %1065 = vmatmul.msk.bf16.gmra.mxu1 %vm552_vm0, %v1101_v17 }
  0x38   : > { %1067 = vmatmul.msk.bf16.gmra.mxu2 %vm552_vm0, %v1103_v18  ;;  %1069 = vmatmul.msk.bf16.gmra.mxu3 %vm552_vm0, %v1105_v19 }
  0x3c   : > { %499 = vperm.xlu1 %1264, %v429_v23   ;;  %494 = vperm.xlu0 %1263, %v428_v24  }
  0x3e   : > { %504 = vperm.xlu2 %1265, %v430_v25  }
  0x44   : > { %509 = vperm.xlu0 %1263, %v431_v26  }
  0x78   : > { %v455_v28 = vpop.permute.xlu2 %454 }
  0x80   : > { %v460_v31 = vpop.permute.xlu2 %459 }
  0x88   : > { %v475_v36 = vpop.permute.xlu2 %474 }
  0x8e   : > { %v435_v27 = vpop.permute.xlu0 %434  ;;  %v445_v29 = vpop.permute.xlu1 %444 }
  0x90   : > { %v1606_v45 = vpop.permute.xlu2 %489 }
  0x96   : > { %v440_v30 = vpop.permute.xlu0 %439  ;;  %v1596_v32 = vpop.permute.xlu1 %449 }
  0x98   : > { %v505_v19 = vpop.permute.xlu2 %504 }
  0x9e   : > { %v465_v33 = vpop.permute.xlu0 %464  ;;  %v1598_v37 = vpop.permute.xlu1 %469 }
  0xa4   : > { %v589_v34 = vpop.f32.mrf.mxu0  ;;  %v599_v35 = vpop.f32.mrf.mxu1 }
  0xa5   : > { %v590_v48 = vadd.f32 %v589_v34, %v435_v27  ;;  %v600_v51 = vadd.f32 %v599_v35, %v455_v28 }
  0xa6   : > { %v480_v38 = vpop.permute.xlu0 %479  ;;  %v485_v52 = vpop.permute.xlu1 %484 }
  0xa7   : > { %v637_v62 = vmul.f32 %v1114_v49, %v590_v48  ;;  %v651_v63 = vmul.f32 %v1126_v50, %v590_v48  ;;  %v674_v3 = vmul.f32 %v1114_v49, %v600_v51  ;;  %v688_v4 = vmul.f32 %v1126_v50, %v600_v51 }
  0xab   : > { %v609_v39 = vpop.f32.mrf.mxu2  ;;  %v619_v40 = vpop.f32.mrf.mxu3 }
  0xac   : > { %v591_v41 = vpop.f32.mrf.mxu0  ;;  %v601_v42 = vpop.f32.mrf.mxu1  ;;  %v610_v57 = vadd.f32 %v609_v39, %v475_v36 }
  0xad   : > { %v592_v5 = vadd.f32 %v591_v41, %v440_v30  ;;  %v602_v6 = vadd.f32 %v601_v42, %v460_v31 }
  0xae   : > { %v495_v0 = vpop.permute.xlu0 %494  ;;  %v711_v11 = vmul.f32 %v1114_v49, %v610_v57  ;;  %v725_v20 = vmul.f32 %v1126_v50, %v610_v57  ;;  %v500_v43 = vpop.permute.xlu1 %499 }
  0xaf   : > { %v620_v12 = vadd.f32 %v619_v40, %v495_v0  ;;  %v638_v21 = vmul.f32 %v1616_v58, %v592_v5  ;;  %v652_v22 = vmul.f32 %v1618_v59, %v592_v5  ;;  %v675_v23 = vmul.f32 %v1616_v58, %v602_v6 }
  0xb0   : > { %v689_v24 = vmul.f32 %v1618_v59, %v602_v6 }
  0xb1   : > { %v748_v39 = vmul.f32 %v1114_v49, %v620_v12  ;;  %v762_v40 = vmul.f32 %v1126_v50, %v620_v12 }
  0xb3   : > { %v611_v53 = vpop.f32.mrf.mxu2  ;;  %v1614_v54 = vpop.f32.mrf.mxu3 }
  0xb4   : > { %v594_v60 = vpop.f32.mrf.mxu0  ;;  %v604_v61 = vpop.f32.mrf.mxu1  ;;  %v612_v30 = vadd.f32 %v611_v53, %v480_v38  ;;  %v622_v57 = vadd.f32 %v1614_v54, %v500_v43 }
  0xb5   : > { %v595_v1 = vadd.f32 %v594_v60, %v445_v29  ;;  %v605_v2 = vadd.f32 %v604_v61, %v465_v33 }
  0xb6   : > { %v510_v61 = vpop.permute.xlu0 %509  ;;  %v726_v6 = vmul.f32 %v1618_v59, %v612_v30 }
  0xb7   : > { %v639_v7 = vmul.f32 %v1118_v55, %v595_v1  ;;  %v649_v8 = vmul.f32 %v1122_v56, %v595_v1  ;;  %v676_v9 = vmul.f32 %v1118_v55, %v605_v2  ;;  %v686_v10 = vmul.f32 %v1122_v56, %v605_v2 }
  0xb8   : > { %v712_v1 = vmul.f32 %v1616_v58, %v612_v30 }
  0xb9   : > { %v653_v15 = vadd.f32 %v649_v8, %v637_v62  ;;  %v655_v16 = vadd.f32 %v651_v63, %v639_v7  ;;  %v690_v17 = vadd.f32 %v686_v10, %v674_v3  ;;  %v692_v18 = vadd.f32 %v688_v4, %v676_v9 }
  0xba   : > { %v749_v9 = vmul.f32 %v1616_v58, %v622_v57  ;;  %v763_v10 = vmul.f32 %v1618_v59, %v622_v57 }
  0xbb   : > { %v657_v25 = vpack.c.bf16 %v653_v15, %v653_v15  ;;  %v659_v26 = vpack.c.bf16 %v655_v16, %v655_v16  ;;  %v694_v27 = vpack.c.bf16 %v690_v17, %v690_v17  ;;  %v614_v28 = vpop.f32.mrf.mxu2  ;;  %v624_v29 = vpop.f32.mrf.mxu3  ;;  %v696_v31 = vpack.c.bf16 %v692_v18, %v692_v18 }
  0xbc   : > { %v615_v33 = vadd.f32 %v614_v28, %v485_v52  ;;  %v625_v34 = vadd.f32 %v624_v29, %v505_v19  ;;  %v596_v35 = vpop.f32.mrf.mxu0  ;;  %v606_v36 = vpop.f32.mrf.mxu1 }
  0xbd   : > { %662 = vst.msk [vmem:[#allocation2] sm:$0xf] %vm661_vm1, %v657_v25  ;;  %v597_v41 = vadd.f32 %v596_v35, %v1596_v32  ;;  %v607_v42 = vadd.f32 %v606_v36, %v1598_v37 }
  0xbe   : > { %664 = vst.msk [vmem:[#allocation2 + $0x8] sm:$0xf] %vm661_vm1, %v659_v26  ;;  %v713_v44 = vmul.f32 %v1118_v55, %v615_v33  ;;  %v723_v46 = vmul.f32 %v1122_v56, %v615_v33  ;;  %v750_v47 = vmul.f32 %v1118_v55, %v625_v34  ;;  %v760_v38 = vmul.f32 %v1122_v56, %v625_v34 }
  0xbf   : > { %699 = vst.msk [vmem:[#allocation2 + $0x10] sm:$0xf] %vm661_vm1, %v694_v27  ;;  %v640_v48 = vmul.f32 %v1620_v13, %v597_v41  ;;  %v650_v49 = vmul.f32 %v1622_v14, %v597_v41  ;;  %v677_v50 = vmul.f32 %v1620_v13, %v607_v42  ;;  %v687_v51 = vmul.f32 %v1622_v14, %v607_v42 }
  0xc0   : > { %701 = vst.msk [vmem:[#allocation2 + $0x18] sm:$0xf] %vm661_vm1, %v696_v31  ;;  %v727_v32 = vadd.f32 %v723_v46, %v711_v11  ;;  %v729_v37 = vadd.f32 %v725_v20, %v713_v44  ;;  %v764_v52 = vadd.f32 %v760_v38, %v748_v39  ;;  %v766_v53 = vadd.f32 %v762_v40, %v750_v47 }
  0xc1   : > { %v654_v55 = vadd.f32 %v650_v49, %v638_v21  ;;  %v656_v56 = vadd.f32 %v652_v22, %v640_v48  ;;  %v691_v60 = vadd.f32 %v687_v51, %v675_v23  ;;  %v693_v3 = vadd.f32 %v689_v24, %v677_v50 }
  0xc2   : > { %v731_v62 = vpack.c.bf16 %v727_v32, %v727_v32  ;;  %v733_v63 = vpack.c.bf16 %v729_v37, %v729_v37  ;;  %v768_v0 = vpack.c.bf16 %v764_v52, %v764_v52  ;;  %v770_v2 = vpack.c.bf16 %v766_v53, %v766_v53 }
  0xc3   : > { %v616_v4 = vpop.f32.mrf.mxu2  ;;  %v626_v5 = vpop.f32.mrf.mxu3  ;;  %v658_v7 = vpack.c.bf16 %v654_v55, %v654_v55  ;;  %v660_v11 = vpack.c.bf16 %v656_v56, %v656_v56  ;;  %v695_v12 = vpack.c.bf16 %v691_v60, %v691_v60 }
  0xc4   : > { %736 = vst.msk [vmem:[#allocation2 + $0x20] sm:$0xf] %vm661_vm1, %v731_v62  ;;  %v617_v54 = vadd.f32 %v616_v4, %v1606_v45  ;;  %v627_v8 = vadd.f32 %v626_v5, %v510_v61  ;;  %v697_v45 = vpack.c.bf16 %v693_v3, %v693_v3 }
  0xc5   : > { %738 = vst.msk [vmem:[#allocation2 + $0x28] sm:$0xf] %vm661_vm1, %v733_v63 }
  0xc6   : > { %773 = vst.msk [vmem:[#allocation2 + $0x30] sm:$0xf] %vm661_vm1, %v768_v0  ;;  %v714_v15 = vmul.f32 %v1620_v13, %v617_v54  ;;  %v724_v16 = vmul.f32 %v1622_v14, %v617_v54  ;;  %v751_v17 = vmul.f32 %v1620_v13, %v627_v8  ;;  %v761_v18 = vmul.f32 %v1622_v14, %v627_v8 }
  0xc7   : > { %775 = vst.msk [vmem:[#allocation2 + $0x38] sm:$0xf] %vm661_vm1, %v770_v2 }
  0xc8   : > { %663 = vst.msk [vmem:[#allocation2 + $0x4] sm:$0xf] %vm661_vm1, %v658_v7  ;;  %v728_v58 = vadd.f32 %v724_v16, %v712_v1  ;;  %v730_v59 = vadd.f32 %v726_v6, %v714_v15  ;;  %v765_v19 = vadd.f32 %v761_v18, %v749_v9  ;;  %v767_v20 = vadd.f32 %v763_v10, %v751_v17 }
  0xc9   : > { %665 = vst.msk [vmem:[#allocation2 + $0xc] sm:$0xf] %vm661_vm1, %v660_v11 }
  0xca   : > { %700 = vst.msk [vmem:[#allocation2 + $0x14] sm:$0xf] %vm661_vm1, %v695_v12  ;;  %v732_v21 = vpack.c.bf16 %v728_v58, %v728_v58  ;;  %v734_v22 = vpack.c.bf16 %v730_v59, %v730_v59  ;;  %v769_v23 = vpack.c.bf16 %v765_v19, %v765_v19  ;;  %v771_v13 = vpack.c.bf16 %v767_v20, %v767_v20 }
  0xcb   : > { %702 = vst.msk [vmem:[#allocation2 + $0x1c] sm:$0xf] %vm661_vm1, %v697_v45 }
  0xcc   : > { %737 = vst.msk [vmem:[#allocation2 + $0x24] sm:$0xf] %vm661_vm1, %v732_v21 }
  0xcd   : > { %739 = vst.msk [vmem:[#allocation2 + $0x2c] sm:$0xf] %vm661_vm1, %v734_v22 }
  0xce   : > { %774 = vst.msk [vmem:[#allocation2 + $0x34] sm:$0xf] %vm661_vm1, %v769_v23 }
  0xcf   : > { %776 = vst.msk [vmem:[#allocation2 + $0x3c] sm:$0xf] %vm661_vm1, %v771_v13 }
  0xd0 PF: > { %s1106_s25 = sshll.u32 %s1346_s16, 4  ;;  %s790_s23 = scalar_lea.vmem %s1731_s3, %s1346_s16  ;;  %v782_v25 = vld [vmem:[%s1511_s19] sm:$0xf]  ;;  %vm807_vm2 = vcmask 261120   ;;  %vm829_vm3 = vcmask 1047808   ;;  %v888_v51 = vlaneseq  ;;  %v1368_v60 = vmov 0.0  }
  0xd1   : > { %s785_s27 = scalar_lea.vmem %s1729_s1, %s1106_s25  ;;  %v1266_v26 = vld [vmem:[%s790_s23] ss:$0 sm:$0xff]  ;;  %s1365_s11 = smov 32   ;;  %vm905_vm5 = vcmask 64512  }
  0xd2   : > { %v1108_v14 = vld [vmem:[%s785_s27 + $0x8] sm:$0xff]  ;;  %v1107_v24 = vld [vmem:[%s785_s27] sm:$0xff]  ;;  %s1366_s18 = smov 16   ;;  %s852_s19 = scalar_lea.vmem [#allocation2], %s1106_s25  ;;  %v889_v37 = vshrl.u32 %v888_v51, 7  ;;  %v893_v52 = vand.u32 127, %v888_v51 }
  0xd3   : > { %817 = vmatpush.bf16.msra.mxu0 %v1108_v14  ;;  %v838_v30 = vld [vmem:[%s1733_s5] sm:$0xf]  ;;  %s1367_s28 = smov 112   ;;  %s1093_s25 = sshll.u32 %s1350_s17, 2 }
  0xd4   : > { %v839_v31 = vunpack.c.l.bf16 %v838_v30  ;;  %v826_v43 = vld [vmem:[%s1734_s6] sm:$0xf]  ;;  %s919_s24 = sadd.s32 %s1346_s16, %s1093_s25  ;;  %vm894_vm4 = vcmp.gt.s32.totalorder %v889_v37, %v893_v52  ;;  %s1755_s17 = scalar_lea.vmem [#allocation3], %s1499_s21 }
  0xd5   : > { %v827_v44 = vunpack.c.l.bf16 %v826_v43  ;;  %v885_v49 = vld [vmem:[%s1506_s29] sm:$0x1]  ;;  %s1094_s15 = sshll.u32 %s919_s24, 3  ;;  %v895_v61 = vsel %vm894_vm4, -1.7677669e+11, %v1368_v60  ;;  %s923_s16 = sshll.u32 %s1755_s17, 4  ;;  %s924_s16 = int_to_ptr.vmem [resolvable:$true] %s923_s16 }
  0xd6   : > { %841 = vrot.lane.b32.xlu1 %v839_v31, %s1366_s18  ;;  %v1111_v35 = vld [vmem:[%s852_s19 + $0x8] sm:$0xff]  ;;  %v1110_v42 = vld [vmem:[%s852_s19] sm:$0xff]  ;;  %v1091_v50 = vadd.f32 -1.0, %v885_v49  ;;  %s921_s12 = scalar_lea.hbm %s1738_s10, %s1094_s15  ;;  %s1757_s18 = sand.u32 1, %s1338_s14  }
  0xd7   : > { %818 = vmatpush.bf16.msra.mxu0 %v1107_v24  ;;  %878 = vmatpush.bf16.msra.mxu1 %v1111_v35  ;;  %v1267_v53 = vld [vmem:[%s1506_s29] ss:$0 sm:$0xff]  ;;  %s925_s22 = sshll.u32 %s921_s12, 4  ;;  %s1756_s29 = smov %s1755_s17  ;;  %s926_s22 = int_to_ptr.hbm [resolvable:$true] %s925_s22 }
  0xd8   : > { %v887_v32 = vmul.f32 1.7677669e+11, %v1091_v50  ;;  %s908_s19 = scalar_lea.sflag [#allocation4], %s1757_s18  ;;  %s1288_s24 = scalar_lea.hbm %s1738_s10, 64 }
  0xda   : > { %1080 = vmatmul.msk.bf16.vlgmr.msra.gmra.mxu0 %vm807_vm2, %v782_v25  ;;  %v901_v57 = vperm.slane %v887_v32, 0 }
  0xdb   : > { %879 = vmatpush.bf16.msra.mxu1 %v1110_v42 }
 0x148   : > { %v842_v36 = vpop.permute.xlu1 %841 }
 0x157   : > { %v820_v27 = vpop.f32.mrf.mxu0 }
 0x158   : > { %v821_v28 = vadd.f32 %v1266_v26, %v820_v27 }
 0x15a   : > { %830 = vrot.lane.b32.xlu0 %v821_v28, %s1365_s11  ;;  %v828_v46 = vmul.f32 %v827_v44, %v821_v28 }
 0x15f   : > { %v822_v29 = vpop.f32.mrf.mxu0 }
 0x1cc   : > { %v831_v33 = vpop.permute.xlu0 %830 }
 0x1cd   : > { %v832_v34 = vsel %vm829_vm3, %v831_v33, %v821_v28 }
 0x1ce   : > { %833 = vrot.lane.b32.xlu0 %v832_v34, %s1365_s11 }
 0x240   : > { %v834_v39 = vpop.permute.xlu0 %833 }
 0x241   : > { %v835_v40 = vsel %vm829_vm3, %v834_v39, %v821_v28 }
 0x242   : > { %v844_v41 = vmul.f32 %v842_v36, %v835_v40 }
 0x244   : > { %846 = vrot.lane.b32.xlu1 %v844_v41, %s1367_s28  ;;  %s1282_s28 = sshra.s32 %s926_s22, 4  ;;  %s1283_s28 = int_to_ptr.hbm [resolvable:$true] %s1282_s28 }
 0x245   : > { %s1284_s30 = scalar_lea.hbm %s1283_s28, 8  ;;  %p1289_p4 = scmp.lt.s32.totalorder %s1283_s28, %s1738_s10 }
 0x246   : > { %p1285_p0 = scmp.ne.s32.totalorder %s1283_s28, %s1284_s30  ;;  %p1290_p5 = scmp.lt.s32.totalorder %s1288_s24, %s1284_s30 }
 0x248   : > { %p1286_p1 = pnand %p1285_p0, %p1475_p3  ;;  %p1291_p6 = por %p1290_p5, %p1289_p4 }
 0x24a   : > { %p1287_p2 = pneg %p1286_p1 }
 0x24c   : > { %p1292_p7 = pnand %p1291_p6, %p1287_p2 }
 0x2b6   : > { %v847_v47 = vpop.permute.xlu1 %846 }
 0x2b7   : > { %v849_v38 = vadd.f32 %v847_v47, %v828_v46 }
 0x2b9   : > { %v850_v48 = vpack.c.bf16 %v849_v38, %v849_v38 }
 0x2bb   : > { %1090 = vmatmul.msk.bf16.vlgmr.msra.gmra.mxu1 %vm807_vm2, %v850_v48 }
 0x338   : > { %v881_v55 = vpop.f32.mrf.mxu1 }
 0x339   : > { %v899_v56 = vmul.f32 %v1267_v53, %v881_v55 }
 0x33b   : > { %v903_v62 = vadd.f32 %v901_v57, %v899_v56 }
 0x33d   : > { %v904_v63 = vadd.f32 %v903_v62, %v895_v61 }
 0x33f   : > { %906 = vst.msk [vmem:[%s1756_s29] sm:$0xff] %vm905_vm5, %v904_v63 }
 0x340   : > { %v883_v0 = vpop.f32.mrf.mxu1 }
 0x341   : > { %1295 = shalt.err (!%p1292_p7)
}
 0x342   : > { %1187 = dma.vmem_to_hbm [thread:$0]  (%p1475_p3), %s924_s16, 128, %s926_s22, %s908_s19  }
 0x343 PF: > { %p1193_p9 = scmp.ge.s32.totalorder %s1362_s20, 2  ;;  %s937_s11 = sand.u32 1, %s1334_s13  }
 0x344   : > { %s938_s12 = scalar_lea.sflag [#allocation4], %s937_s11 }
 0x345   : > { %p1190_p10 = pnand %p1193_p9, %p1484_p8 }
 0x347   : > { %p1191_p11 = pneg %p1190_p10 }
 0x349   : > { %1329 = dma.done.wait (%p1191_p11), %s938_s12, 128  }
 0x34a   : > { %1331 = vsyncadd (%p1191_p11), %s938_s12, 4294967168  ;;  %s23_s20 = sadd.s32 1, %s1362_s20   ;;  %s1759_s17 = sld [smem:[#allocation6_spill]] }
 0x34b   : > { %p20_p12 = scmp.ge.s32.totalorder %s23_s20, 10   ;;  %s1760_s15 = sld [smem:[#allocation12_spill]] }
 0x34c   : > { %s1761_s16 = sld [smem:[#allocation7_spill]]  ;;  %s1765_s13 = smov %s1338_s14 }
 0x34d   : > { %s1762_s26 = sld [smem:[#allocation8_spill]] }
 0x34e   : > { %s1763_s18 = sld [smem:[#allocation9_spill]] }
 0x34f   : > { %s1764_s19 = sld [smem:[#allocation10_spill]]  ;;  %22 = sbr.rel (!%p20_p12) target bundleno = 5 (0x5), region = 111 }
 0x350   : > { %s1766_s14 = smov %s1759_s17 }
 0x353   : > { %s1767_s17 = smov %s1762_s26 }
 0x354   :  { %944 = vsyncpa [#allocation4], 1 }
 0x355   :  { %946 = vsyncpa [#allocation4 + $0x1], 1 }

</bundles_post_ra>
